<compile_context>
chip_gen: v7x
topology: tpu7x:2x2x1
jax: 0.10.0
libtpu: 0.0.40
codegen_flags: <defaults>
</compile_context>

<pallas_src>
import functools

import jax
import jax.numpy as jnp
from jax.experimental import pallas as pl
from jax.experimental.pallas import tpu as pltpu


# ----------------------------- in-kernel LSTM direction -----------------------------
def _lstm_direction(gates_in, w_hh, hseq_ref, *, T, B, H, reverse, col_off, store):
    """One LSTM direction with the input projection already applied.

    gates_in : (T*B, 4H) value = x @ W_ih + (b_ih + b_hh), rows ordered t*B + b.
    w_hh     : (H, 4H) value, hidden->gates weights (PyTorch weight_hh.T).
    hseq_ref : (T*B, 2H) VMEM scratch; per-step hidden goes to
               [t*B:(t+1)*B, col_off:col_off+H] when store=True.
    Returns the final (h, c), each (B, H). Gate order follows PyTorch: i, f, g, o.
    """
    h = jnp.zeros((B, H), jnp.float32)
    c = jnp.zeros((B, H), jnp.float32)
    steps = range(T - 1, -1, -1) if reverse else range(T)
    for t in steps:  # static, fully unrolled: T is tiny and compile-time constant
        g = gates_in[t * B:(t + 1) * B, :] + jnp.dot(
            h, w_hh, preferred_element_type=jnp.float32)
        sig = jax.nn.sigmoid(g)     # one full-width (4H-lane) pass
        tnh = jnp.tanh(g)           # one full-width (4H-lane) pass
        i_g = sig[:, 0 * H:1 * H]
        f_g = sig[:, 1 * H:2 * H]
        g_g = tnh[:, 2 * H:3 * H]
        o_g = sig[:, 3 * H:4 * H]
        c = f_g * c + i_g * g_g
        h = o_g * jnp.tanh(c)
        if store:
            hseq_ref[t * B:(t + 1) * B, col_off:col_off + H] = h
    return h, c


# ----------------------------- fused TextRNN kernel -----------------------------
def _textrnn_kernel(*refs, T, B, H, num_layers):
    """Fused forward: num_layers bidirectional LSTM layers + final FC.

    refs layout (L = num_layers):
      refs[0]                   : (T*B, D) embedded input, rows ordered t*B + b
      refs[1+6*l : 7+6*l]       : layer l weights (wih_f, whh_f, b_f, wih_b, whh_b, b_b)
      refs[1+6*L], refs[2+6*L]  : fc_w (2H, C), fc_b (1, C)
      refs[3+6*L]               : output logits (B, C)
      refs[4+6*L]               : (T*B, 2H) hidden-sequence VMEM scratch
    """
    fcw_ref = refs[1 + 6 * num_layers]
    fcb_ref = refs[2 + 6 * num_layers]
    out_ref = refs[3 + 6 * num_layers]
    hseq_sc = refs[4 + 6 * num_layers]

    h_f = h_b = None
    for layer in range(num_layers):
        w = refs[1 + 6 * layer:1 + 6 * (layer + 1)]
        wih_f, whh_f, b_f, wih_b, whh_b, b_b = (r[...] for r in w)

        # Layer input: embeddings for layer 0, previous layer's (T*B, 2H) output after.
        inp = refs[0][...] if layer == 0 else hseq_sc[...]

        # Hoisted input projection: one matmul per direction for the whole sequence.
        gates_f = jnp.dot(inp, wih_f, preferred_element_type=jnp.float32) + b_f
        gates_b = jnp.dot(inp, wih_b, preferred_element_type=jnp.float32) + b_b

        last = layer == num_layers - 1
        h_f, _ = _lstm_direction(gates_f, whh_f, hseq_sc, T=T, B=B, H=H,
                                 reverse=False, col_off=0, store=not last)
        if last:
            # out[:, T-1, H:2H] is the backward LSTM's hidden after its FIRST step
            # (zero initial state, input position T-1): c = i*g, h = o*tanh(c).
            g_last = gates_b[(T - 1) * B:T * B, :]
            sig = jax.nn.sigmoid(g_last)
            tnh = jnp.tanh(g_last)
            c1 = sig[:, 0 * H:1 * H] * tnh[:, 2 * H:3 * H]
            h_b = sig[:, 3 * H:4 * H] * jnp.tanh(c1)
        else:
            h_b, _ = _lstm_direction(gates_b, whh_b, hseq_sc, T=T, B=B, H=H,
                                     reverse=True, col_off=H, store=True)

    # Final FC on the last timestep: concat(h_f, h_b) @ fc_w + fc_b, with the concat
    # replaced by a row-split of fc_w (no in-kernel concatenate needed).
    logits = (jnp.dot(h_f, fcw_ref[0:H, :], preferred_element_type=jnp.float32)
              + jnp.dot(h_b, fcw_ref[H:2 * H, :], preferred_element_type=jnp.float32)
              + fcb_ref[...])
    out_ref[...] = logits.astype(out_ref.dtype)


# ----------------------------- wrapper -----------------------------
def text_rnn_forward(params, tokens):
    """tokens: (B, T) int32 -> logits (B, num_classes)."""
    B, T = tokens.shape
    H = params["lstm"][0][0][1].shape[0]      # w_hh is (H, 4H)
    C = params["fc_w"].shape[1]
    num_layers = len(params["lstm"])

    # Embedding lookup, time-major flattened so kernel rows are ordered t*B + b.
    # (Plain-JAX glue: one tiny gather; everything else runs inside one Pallas kernel.)
    x_flat = jnp.take(params["embedding"], tokens.T.reshape(-1), axis=0)  # (T*B, E)

    flat_weights = []
    for fwd_p, bwd_p in params["lstm"]:
        flat_weights.extend(fwd_p)
        flat_weights.extend(bwd_p)

    kernel = functools.partial(_textrnn_kernel, T=T, B=B, H=H, num_layers=num_layers)
    vmem = pl.BlockSpec(memory_space=pltpu.MemorySpace.VMEM)
    n_inputs = 1 + len(flat_weights) + 2
    return pl.pallas_call(
        kernel,
        out_shape=jax.ShapeDtypeStruct((B, C), jnp.float32),
        in_specs=[vmem] * n_inputs,
        out_specs=vmem,
        scratch_shapes=[pltpu.VMEM((T * B, 2 * H), jnp.float32)],
    )(x_flat, *flat_weights, params["fc_w"], params["fc_b"])


# ----------------------------- params -----------------------------
def init_params(key, n_vocab, embed, hidden, num_layers, num_classes):
    params = {}
    k_emb, key = jax.random.split(key)
    emb = jax.random.normal(k_emb, (n_vocab, embed), jnp.float32) * 0.1
    emb = emb.at[n_vocab - 1].set(0.0)  # padding_idx row is zero-initialized
    params["embedding"] = emb

    scale = 1.0 / jnp.sqrt(hidden)
    lstm = []
    for layer in range(num_layers):
        in_dim = embed if layer == 0 else 2 * hidden
        dir_params = []
        for _ in range(2):  # forward, backward
            key, k1, k2, k3, k4 = jax.random.split(key, 5)
            w_ih = jax.random.uniform(k1, (in_dim, 4 * hidden), jnp.float32, -scale, scale)
            w_hh = jax.random.uniform(k2, (hidden, 4 * hidden), jnp.float32, -scale, scale)
            b_ih = jax.random.uniform(k3, (4 * hidden,), jnp.float32, -scale, scale)
            b_hh = jax.random.uniform(k4, (4 * hidden,), jnp.float32, -scale, scale)
            dir_params.append((w_ih, w_hh, (b_ih + b_hh).reshape(1, 4 * hidden)))
        lstm.append(tuple(dir_params))
    params["lstm"] = lstm

    key, kw, kb = jax.random.split(key, 3)
    fc_scale = 1.0 / jnp.sqrt(2 * hidden)
    params["fc_w"] = jax.random.uniform(
        kw, (2 * hidden, num_classes), jnp.float32, -fc_scale, fc_scale)
    params["fc_b"] = jax.random.uniform(
        kb, (1, num_classes), jnp.float32, -fc_scale, fc_scale)
    return params


if __name__ == "__main__":
    # Small config consistent with the module's forward.
    N_VOCAB = 100
    EMBED = 16
    HIDDEN = 32
    NUM_LAYERS = 2
    NUM_CLASSES = 5
    BATCH = 2
    SEQ = 8

    key = jax.random.PRNGKey(0)
    k_params, k_tokens = jax.random.split(key)
    params = init_params(k_params, N_VOCAB, EMBED, HIDDEN, NUM_LAYERS, NUM_CLASSES)
    tokens = jax.random.randint(k_tokens, (BATCH, SEQ), 0, N_VOCAB, dtype=jnp.int32)

    logits = jax.jit(text_rnn_forward)(params, tokens)
    jax.block_until_ready(logits)
    assert logits.shape == (BATCH, NUM_CLASSES)
    assert bool(jnp.all(jnp.isfinite(logits)))
    print("KERNEL_OK")
</pallas_src>

<mosaic_0001>
module attributes {stable_mosaic.version = 11 : i64} {
  func.func @_textrnn_kernel(%arg0: memref<16x16xf32, #tpu.memory_space<vmem>>, %arg1: memref<16x128xf32, #tpu.memory_space<vmem>>, %arg2: memref<32x128xf32, #tpu.memory_space<vmem>>, %arg3: memref<1x128xf32, #tpu.memory_space<vmem>>, %arg4: memref<16x128xf32, #tpu.memory_space<vmem>>, %arg5: memref<32x128xf32, #tpu.memory_space<vmem>>, %arg6: memref<1x128xf32, #tpu.memory_space<vmem>>, %arg7: memref<64x128xf32, #tpu.memory_space<vmem>>, %arg8: memref<32x128xf32, #tpu.memory_space<vmem>>, %arg9: memref<1x128xf32, #tpu.memory_space<vmem>>, %arg10: memref<64x128xf32, #tpu.memory_space<vmem>>, %arg11: memref<32x128xf32, #tpu.memory_space<vmem>>, %arg12: memref<1x128xf32, #tpu.memory_space<vmem>>, %arg13: memref<64x5xf32, #tpu.memory_space<vmem>>, %arg14: memref<1x5xf32, #tpu.memory_space<vmem>>, %arg15: memref<2x5xf32, #tpu.memory_space<vmem>>, %arg16: memref<16x64xf32, #tpu.memory_space<vmem>>) attributes {dimension_semantics = [], scalar_prefetch = 0 : i64, scratch_operands = 1 : i64, tpu.core_type = #tpu.core_type<tc>} {
    %c0 = arith.constant 0 : index
    %c0_0 = arith.constant 0 : index
    %0 = vector.load %arg1[%c0, %c0_0] : memref<16x128xf32, #tpu.memory_space<vmem>>, vector<16x128xf32>
    %c0_1 = arith.constant 0 : index
    %c0_2 = arith.constant 0 : index
    %1 = vector.load %arg2[%c0_1, %c0_2] : memref<32x128xf32, #tpu.memory_space<vmem>>, vector<32x128xf32>
    %c0_3 = arith.constant 0 : index
    %c0_4 = arith.constant 0 : index
    %2 = vector.load %arg3[%c0_3, %c0_4] : memref<1x128xf32, #tpu.memory_space<vmem>>, vector<1x128xf32>
    %c0_5 = arith.constant 0 : index
    %c0_6 = arith.constant 0 : index
    %3 = vector.load %arg4[%c0_5, %c0_6] : memref<16x128xf32, #tpu.memory_space<vmem>>, vector<16x128xf32>
    %c0_7 = arith.constant 0 : index
    %c0_8 = arith.constant 0 : index
    %4 = vector.load %arg5[%c0_7, %c0_8] : memref<32x128xf32, #tpu.memory_space<vmem>>, vector<32x128xf32>
    %c0_9 = arith.constant 0 : index
    %c0_10 = arith.constant 0 : index
    %5 = vector.load %arg6[%c0_9, %c0_10] : memref<1x128xf32, #tpu.memory_space<vmem>>, vector<1x128xf32>
    %c0_11 = arith.constant 0 : index
    %c0_12 = arith.constant 0 : index
    %6 = vector.load %arg0[%c0_11, %c0_12] : memref<16x16xf32, #tpu.memory_space<vmem>>, vector<16x16xf32>
    %cst = arith.constant dense<0.000000e+00> : vector<16x128xf32>
    %7 = tpu.matmul %6, %0, %cst {dimension_numbers = #tpu.dot_dimension_numbers<[1], [0], [0], [1], [0, 0, 1, 1], [], []>} : vector<16x16xf32>, vector<16x128xf32>, vector<16x128xf32> -> vector<16x128xf32>
    %8 = vector.broadcast %2 : vector<1x128xf32> to vector<16x128xf32>
    %9 = arith.addf %7, %8 : vector<16x128xf32>
    %cst_13 = arith.constant dense<0.000000e+00> : vector<16x128xf32>
    %10 = tpu.matmul %6, %3, %cst_13 {dimension_numbers = #tpu.dot_dimension_numbers<[1], [0], [0], [1], [0, 0, 1, 1], [], []>} : vector<16x16xf32>, vector<16x128xf32>, vector<16x128xf32> -> vector<16x128xf32>
    %11 = vector.broadcast %5 : vector<1x128xf32> to vector<16x128xf32>
    %12 = arith.addf %10, %11 : vector<16x128xf32>
    %cst_14 = arith.constant 0.000000e+00 : f32
    %13 = vector.broadcast %cst_14 : f32 to vector<2x32xf32>
    %cst_15 = arith.constant 0.000000e+00 : f32
    %14 = vector.broadcast %cst_15 : f32 to vector<2x32xf32>
    %15 = vector.extract_strided_slice %9 {offsets = [0, 0], sizes = [2, 128], strides = [1, 1]} : vector<16x128xf32> to vector<2x128xf32>
    %cst_16 = arith.constant dense<0.000000e+00> : vector<2x128xf32>
    %16 = tpu.matmul %13, %1, %cst_16 {dimension_numbers = #tpu.dot_dimension_numbers<[1], [0], [0], [1], [0, 0, 1, 1], [], []>} : vector<2x32xf32>, vector<32x128xf32>, vector<2x128xf32> -> vector<2x128xf32>
    %17 = arith.addf %15, %16 : vector<2x128xf32>
    %18 = arith.negf %17 : vector<2x128xf32>
    %19 = math.exp %18 : vector<2x128xf32>
    %cst_17 = arith.constant 1.000000e+00 : f32
    %20 = vector.broadcast %cst_17 : f32 to vector<2x128xf32>
    %21 = arith.addf %20, %19 : vector<2x128xf32>
    %22 = arith.divf %20, %21 : vector<2x128xf32>
    %23 = math.tanh %17 : vector<2x128xf32>
    %24 = vector.extract_strided_slice %22 {offsets = [0, 0], sizes = [2, 32], strides = [1, 1]} : vector<2x128xf32> to vector<2x32xf32>
    %25 = vector.extract_strided_slice %22 {offsets = [0, 32], sizes = [2, 32], strides = [1, 1]} : vector<2x128xf32> to vector<2x32xf32>
    %26 = vector.extract_strided_slice %23 {offsets = [0, 64], sizes = [2, 32], strides = [1, 1]} : vector<2x128xf32> to vector<2x32xf32>
    %27 = vector.extract_strided_slice %22 {offsets = [0, 96], sizes = [2, 32], strides = [1, 1]} : vector<2x128xf32> to vector<2x32xf32>
    %28 = arith.mulf %25, %14 : vector<2x32xf32>
    %29 = arith.mulf %24, %26 : vector<2x32xf32>
    %30 = arith.addf %28, %29 : vector<2x32xf32>
    %31 = math.tanh %30 : vector<2x32xf32>
    %32 = arith.mulf %27, %31 : vector<2x32xf32>
    %c0_18 = arith.constant 0 : index
    %c0_19 = arith.constant 0 : index
    %33 = vector.load %arg16[%c0_18, %c0_19] : memref<16x64xf32, #tpu.memory_space<vmem>>, vector<2x32xf32>
    tpu.vector_store %arg16[%c0_18, %c0_19], %32 {strides = array<i32>} : memref<16x64xf32, #tpu.memory_space<vmem>>, vector<2x32xf32>,
    %34 = vector.extract_strided_slice %9 {offsets = [2, 0], sizes = [2, 128], strides = [1, 1]} : vector<16x128xf32> to vector<2x128xf32>
    %cst_20 = arith.constant dense<0.000000e+00> : vector<2x128xf32>
    %35 = tpu.matmul %32, %1, %cst_20 {dimension_numbers = #tpu.dot_dimension_numbers<[1], [0], [0], [1], [0, 0, 1, 1], [], []>} : vector<2x32xf32>, vector<32x128xf32>, vector<2x128xf32> -> vector<2x128xf32>
    %36 = arith.addf %34, %35 : vector<2x128xf32>
    %37 = arith.negf %36 : vector<2x128xf32>
    %38 = math.exp %37 : vector<2x128xf32>
    %cst_21 = arith.constant 1.000000e+00 : f32
    %39 = vector.broadcast %cst_21 : f32 to vector<2x128xf32>
    %40 = arith.addf %39, %38 : vector<2x128xf32>
    %41 = arith.divf %39, %40 : vector<2x128xf32>
    %42 = math.tanh %36 : vector<2x128xf32>
    %43 = vector.extract_strided_slice %41 {offsets = [0, 0], sizes = [2, 32], strides = [1, 1]} : vector<2x128xf32> to vector<2x32xf32>
    %44 = vector.extract_strided_slice %41 {offsets = [0, 32], sizes = [2, 32], strides = [1, 1]} : vector<2x128xf32> to vector<2x32xf32>
    %45 = vector.extract_strided_slice %42 {offsets = [0, 64], sizes = [2, 32], strides = [1, 1]} : vector<2x128xf32> to vector<2x32xf32>
    %46 = vector.extract_strided_slice %41 {offsets = [0, 96], sizes = [2, 32], strides = [1, 1]} : vector<2x128xf32> to vector<2x32xf32>
    %47 = arith.mulf %44, %30 : vector<2x32xf32>
    %48 = arith.mulf %43, %45 : vector<2x32xf32>
    %49 = arith.addf %47, %48 : vector<2x32xf32>
    %50 = math.tanh %49 : vector<2x32xf32>
    %51 = arith.mulf %46, %50 : vector<2x32xf32>
    %c2 = arith.constant 2 : index
    %c0_22 = arith.constant 0 : index
    %52 = vector.load %arg16[%c2, %c0_22] : memref<16x64xf32, #tpu.memory_space<vmem>>, vector<2x32xf32>
    tpu.vector_store %arg16[%c2, %c0_22], %51 {strides = array<i32>} : memref<16x64xf32, #tpu.memory_space<vmem>>, vector<2x32xf32>,
    %53 = vector.extract_strided_slice %9 {offsets = [4, 0], sizes = [2, 128], strides = [1, 1]} : vector<16x128xf32> to vector<2x128xf32>
    %cst_23 = arith.constant dense<0.000000e+00> : vector<2x128xf32>
    %54 = tpu.matmul %51, %1, %cst_23 {dimension_numbers = #tpu.dot_dimension_numbers<[1], [0], [0], [1], [0, 0, 1, 1], [], []>} : vector<2x32xf32>, vector<32x128xf32>, vector<2x128xf32> -> vector<2x128xf32>
    %55 = arith.addf %53, %54 : vector<2x128xf32>
    %56 = arith.negf %55 : vector<2x128xf32>
    %57 = math.exp %56 : vector<2x128xf32>
    %cst_24 = arith.constant 1.000000e+00 : f32
    %58 = vector.broadcast %cst_24 : f32 to vector<2x128xf32>
    %59 = arith.addf %58, %57 : vector<2x128xf32>
    %60 = arith.divf %58, %59 : vector<2x128xf32>
    %61 = math.tanh %55 : vector<2x128xf32>
    %62 = vector.extract_strided_slice %60 {offsets = [0, 0], sizes = [2, 32], strides = [1, 1]} : vector<2x128xf32> to vector<2x32xf32>
    %63 = vector.extract_strided_slice %60 {offsets = [0, 32], sizes = [2, 32], strides = [1, 1]} : vector<2x128xf32> to vector<2x32xf32>
    %64 = vector.extract_strided_slice %61 {offsets = [0, 64], sizes = [2, 32], strides = [1, 1]} : vector<2x128xf32> to vector<2x32xf32>
    %65 = vector.extract_strided_slice %60 {offsets = [0, 96], sizes = [2, 32], strides = [1, 1]} : vector<2x128xf32> to vector<2x32xf32>
    %66 = arith.mulf %63, %49 : vector<2x32xf32>
    %67 = arith.mulf %62, %64 : vector<2x32xf32>
    %68 = arith.addf %66, %67 : vector<2x32xf32>
    %69 = math.tanh %68 : vector<2x32xf32>
    %70 = arith.mulf %65, %69 : vector<2x32xf32>
    %c4 = arith.constant 4 : index
    %c0_25 = arith.constant 0 : index
    %71 = vector.load %arg16[%c4, %c0_25] : memref<16x64xf32, #tpu.memory_space<vmem>>, vector<2x32xf32>
    tpu.vector_store %arg16[%c4, %c0_25], %70 {strides = array<i32>} : memref<16x64xf32, #tpu.memory_space<vmem>>, vector<2x32xf32>,
    %72 = vector.extract_strided_slice %9 {offsets = [6, 0], sizes = [2, 128], strides = [1, 1]} : vector<16x128xf32> to vector<2x128xf32>
    %cst_26 = arith.constant dense<0.000000e+00> : vector<2x128xf32>
    %73 = tpu.matmul %70, %1, %cst_26 {dimension_numbers = #tpu.dot_dimension_numbers<[1], [0], [0], [1], [0, 0, 1, 1], [], []>} : vector<2x32xf32>, vector<32x128xf32>, vector<2x128xf32> -> vector<2x128xf32>
    %74 = arith.addf %72, %73 : vector<2x128xf32>
    %75 = arith.negf %74 : vector<2x128xf32>
    %76 = math.exp %75 : vector<2x128xf32>
    %cst_27 = arith.constant 1.000000e+00 : f32
    %77 = vector.broadcast %cst_27 : f32 to vector<2x128xf32>
    %78 = arith.addf %77, %76 : vector<2x128xf32>
    %79 = arith.divf %77, %78 : vector<2x128xf32>
    %80 = math.tanh %74 : vector<2x128xf32>
    %81 = vector.extract_strided_slice %79 {offsets = [0, 0], sizes = [2, 32], strides = [1, 1]} : vector<2x128xf32> to vector<2x32xf32>
    %82 = vector.extract_strided_slice %79 {offsets = [0, 32], sizes = [2, 32], strides = [1, 1]} : vector<2x128xf32> to vector<2x32xf32>
    %83 = vector.extract_strided_slice %80 {offsets = [0, 64], sizes = [2, 32], strides = [1, 1]} : vector<2x128xf32> to vector<2x32xf32>
    %84 = vector.extract_strided_slice %79 {offsets = [0, 96], sizes = [2, 32], strides = [1, 1]} : vector<2x128xf32> to vector<2x32xf32>
    %85 = arith.mulf %82, %68 : vector<2x32xf32>
    %86 = arith.mulf %81, %83 : vector<2x32xf32>
    %87 = arith.addf %85, %86 : vector<2x32xf32>
    %88 = math.tanh %87 : vector<2x32xf32>
    %89 = arith.mulf %84, %88 : vector<2x32xf32>
    %c6 = arith.constant 6 : index
    %c0_28 = arith.constant 0 : index
    %90 = vector.load %arg16[%c6, %c0_28] : memref<16x64xf32, #tpu.memory_space<vmem>>, vector<2x32xf32>
    tpu.vector_store %arg16[%c6, %c0_28], %89 {strides = array<i32>} : memref<16x64xf32, #tpu.memory_space<vmem>>, vector<2x32xf32>,
    %91 = vector.extract_strided_slice %9 {offsets = [8, 0], sizes = [2, 128], strides = [1, 1]} : vector<16x128xf32> to vector<2x128xf32>
    %cst_29 = arith.constant dense<0.000000e+00> : vector<2x128xf32>
    %92 = tpu.matmul %89, %1, %cst_29 {dimension_numbers = #tpu.dot_dimension_numbers<[1], [0], [0], [1], [0, 0, 1, 1], [], []>} : vector<2x32xf32>, vector<32x128xf32>, vector<2x128xf32> -> vector<2x128xf32>
    %93 = arith.addf %91, %92 : vector<2x128xf32>
    %94 = arith.negf %93 : vector<2x128xf32>
    %95 = math.exp %94 : vector<2x128xf32>
    %cst_30 = arith.constant 1.000000e+00 : f32
    %96 = vector.broadcast %cst_30 : f32 to vector<2x128xf32>
    %97 = arith.addf %96, %95 : vector<2x128xf32>
    %98 = arith.divf %96, %97 : vector<2x128xf32>
    %99 = math.tanh %93 : vector<2x128xf32>
    %100 = vector.extract_strided_slice %98 {offsets = [0, 0], sizes = [2, 32], strides = [1, 1]} : vector<2x128xf32> to vector<2x32xf32>
    %101 = vector.extract_strided_slice %98 {offsets = [0, 32], sizes = [2, 32], strides = [1, 1]} : vector<2x128xf32> to vector<2x32xf32>
    %102 = vector.extract_strided_slice %99 {offsets = [0, 64], sizes = [2, 32], strides = [1, 1]} : vector<2x128xf32> to vector<2x32xf32>
    %103 = vector.extract_strided_slice %98 {offsets = [0, 96], sizes = [2, 32], strides = [1, 1]} : vector<2x128xf32> to vector<2x32xf32>
    %104 = arith.mulf %101, %87 : vector<2x32xf32>
    %105 = arith.mulf %100, %102 : vector<2x32xf32>
    %106 = arith.addf %104, %105 : vector<2x32xf32>
    %107 = math.tanh %106 : vector<2x32xf32>
    %108 = arith.mulf %103, %107 : vector<2x32xf32>
    %c8 = arith.constant 8 : index
    %c0_31 = arith.constant 0 : index
    %109 = vector.load %arg16[%c8, %c0_31] : memref<16x64xf32, #tpu.memory_space<vmem>>, vector<2x32xf32>
    tpu.vector_store %arg16[%c8, %c0_31], %108 {strides = array<i32>} : memref<16x64xf32, #tpu.memory_space<vmem>>, vector<2x32xf32>,
    %110 = vector.extract_strided_slice %9 {offsets = [10, 0], sizes = [2, 128], strides = [1, 1]} : vector<16x128xf32> to vector<2x128xf32>
    %cst_32 = arith.constant dense<0.000000e+00> : vector<2x128xf32>
    %111 = tpu.matmul %108, %1, %cst_32 {dimension_numbers = #tpu.dot_dimension_numbers<[1], [0], [0], [1], [0, 0, 1, 1], [], []>} : vector<2x32xf32>, vector<32x128xf32>, vector<2x128xf32> -> vector<2x128xf32>
    %112 = arith.addf %110, %111 : vector<2x128xf32>
    %113 = arith.negf %112 : vector<2x128xf32>
    %114 = math.exp %113 : vector<2x128xf32>
    %cst_33 = arith.constant 1.000000e+00 : f32
    %115 = vector.broadcast %cst_33 : f32 to vector<2x128xf32>
    %116 = arith.addf %115, %114 : vector<2x128xf32>
    %117 = arith.divf %115, %116 : vector<2x128xf32>
    %118 = math.tanh %112 : vector<2x128xf32>
    %119 = vector.extract_strided_slice %117 {offsets = [0, 0], sizes = [2, 32], strides = [1, 1]} : vector<2x128xf32> to vector<2x32xf32>
    %120 = vector.extract_strided_slice %117 {offsets = [0, 32], sizes = [2, 32], strides = [1, 1]} : vector<2x128xf32> to vector<2x32xf32>
    %121 = vector.extract_strided_slice %118 {offsets = [0, 64], sizes = [2, 32], strides = [1, 1]} : vector<2x128xf32> to vector<2x32xf32>
    %122 = vector.extract_strided_slice %117 {offsets = [0, 96], sizes = [2, 32], strides = [1, 1]} : vector<2x128xf32> to vector<2x32xf32>
    %123 = arith.mulf %120, %106 : vector<2x32xf32>
    %124 = arith.mulf %119, %121 : vector<2x32xf32>
    %125 = arith.addf %123, %124 : vector<2x32xf32>
    %126 = math.tanh %125 : vector<2x32xf32>
    %127 = arith.mulf %122, %126 : vector<2x32xf32>
    %c10 = arith.constant 10 : index
    %c0_34 = arith.constant 0 : index
    %128 = vector.load %arg16[%c10, %c0_34] : memref<16x64xf32, #tpu.memory_space<vmem>>, vector<2x32xf32>
    tpu.vector_store %arg16[%c10, %c0_34], %127 {strides = array<i32>} : memref<16x64xf32, #tpu.memory_space<vmem>>, vector<2x32xf32>,
    %129 = vector.extract_strided_slice %9 {offsets = [12, 0], sizes = [2, 128], strides = [1, 1]} : vector<16x128xf32> to vector<2x128xf32>
    %cst_35 = arith.constant dense<0.000000e+00> : vector<2x128xf32>
    %130 = tpu.matmul %127, %1, %cst_35 {dimension_numbers = #tpu.dot_dimension_numbers<[1], [0], [0], [1], [0, 0, 1, 1], [], []>} : vector<2x32xf32>, vector<32x128xf32>, vector<2x128xf32> -> vector<2x128xf32>
    %131 = arith.addf %129, %130 : vector<2x128xf32>
    %132 = arith.negf %131 : vector<2x128xf32>
    %133 = math.exp %132 : vector<2x128xf32>
    %cst_36 = arith.constant 1.000000e+00 : f32
    %134 = vector.broadcast %cst_36 : f32 to vector<2x128xf32>
    %135 = arith.addf %134, %133 : vector<2x128xf32>
    %136 = arith.divf %134, %135 : vector<2x128xf32>
    %137 = math.tanh %131 : vector<2x128xf32>
    %138 = vector.extract_strided_slice %136 {offsets = [0, 0], sizes = [2, 32], strides = [1, 1]} : vector<2x128xf32> to vector<2x32xf32>
    %139 = vector.extract_strided_slice %136 {offsets = [0, 32], sizes = [2, 32], strides = [1, 1]} : vector<2x128xf32> to vector<2x32xf32>
    %140 = vector.extract_strided_slice %137 {offsets = [0, 64], sizes = [2, 32], strides = [1, 1]} : vector<2x128xf32> to vector<2x32xf32>
    %141 = vector.extract_strided_slice %136 {offsets = [0, 96], sizes = [2, 32], strides = [1, 1]} : vector<2x128xf32> to vector<2x32xf32>
    %142 = arith.mulf %139, %125 : vector<2x32xf32>
    %143 = arith.mulf %138, %140 : vector<2x32xf32>
    %144 = arith.addf %142, %143 : vector<2x32xf32>
    %145 = math.tanh %144 : vector<2x32xf32>
    %146 = arith.mulf %141, %145 : vector<2x32xf32>
    %c12 = arith.constant 12 : index
    %c0_37 = arith.constant 0 : index
    %147 = vector.load %arg16[%c12, %c0_37] : memref<16x64xf32, #tpu.memory_space<vmem>>, vector<2x32xf32>
    tpu.vector_store %arg16[%c12, %c0_37], %146 {strides = array<i32>} : memref<16x64xf32, #tpu.memory_space<vmem>>, vector<2x32xf32>,
    %148 = vector.extract_strided_slice %9 {offsets = [14, 0], sizes = [2, 128], strides = [1, 1]} : vector<16x128xf32> to vector<2x128xf32>
    %cst_38 = arith.constant dense<0.000000e+00> : vector<2x128xf32>
    %149 = tpu.matmul %146, %1, %cst_38 {dimension_numbers = #tpu.dot_dimension_numbers<[1], [0], [0], [1], [0, 0, 1, 1], [], []>} : vector<2x32xf32>, vector<32x128xf32>, vector<2x128xf32> -> vector<2x128xf32>
    %150 = arith.addf %148, %149 : vector<2x128xf32>
    %151 = arith.negf %150 : vector<2x128xf32>
    %152 = math.exp %151 : vector<2x128xf32>
    %cst_39 = arith.constant 1.000000e+00 : f32
    %153 = vector.broadcast %cst_39 : f32 to vector<2x128xf32>
    %154 = arith.addf %153, %152 : vector<2x128xf32>
    %155 = arith.divf %153, %154 : vector<2x128xf32>
    %156 = math.tanh %150 : vector<2x128xf32>
    %157 = vector.extract_strided_slice %155 {offsets = [0, 0], sizes = [2, 32], strides = [1, 1]} : vector<2x128xf32> to vector<2x32xf32>
    %158 = vector.extract_strided_slice %155 {offsets = [0, 32], sizes = [2, 32], strides = [1, 1]} : vector<2x128xf32> to vector<2x32xf32>
    %159 = vector.extract_strided_slice %156 {offsets = [0, 64], sizes = [2, 32], strides = [1, 1]} : vector<2x128xf32> to vector<2x32xf32>
    %160 = vector.extract_strided_slice %155 {offsets = [0, 96], sizes = [2, 32], strides = [1, 1]} : vector<2x128xf32> to vector<2x32xf32>
    %161 = arith.mulf %158, %144 : vector<2x32xf32>
    %162 = arith.mulf %157, %159 : vector<2x32xf32>
    %163 = arith.addf %161, %162 : vector<2x32xf32>
    %164 = math.tanh %163 : vector<2x32xf32>
    %165 = arith.mulf %160, %164 : vector<2x32xf32>
    %c14 = arith.constant 14 : index
    %c0_40 = arith.constant 0 : index
    %166 = vector.load %arg16[%c14, %c0_40] : memref<16x64xf32, #tpu.memory_space<vmem>>, vector<2x32xf32>
    tpu.vector_store %arg16[%c14, %c0_40], %165 {strides = array<i32>} : memref<16x64xf32, #tpu.memory_space<vmem>>, vector<2x32xf32>,
    %cst_41 = arith.constant 0.000000e+00 : f32
    %167 = vector.broadcast %cst_41 : f32 to vector<2x32xf32>
    %cst_42 = arith.constant 0.000000e+00 : f32
    %168 = vector.broadcast %cst_42 : f32 to vector<2x32xf32>
    %169 = vector.extract_strided_slice %12 {offsets = [14, 0], sizes = [2, 128], strides = [1, 1]} : vector<16x128xf32> to vector<2x128xf32>
    %cst_43 = arith.constant dense<0.000000e+00> : vector<2x128xf32>
    %170 = tpu.matmul %167, %4, %cst_43 {dimension_numbers = #tpu.dot_dimension_numbers<[1], [0], [0], [1], [0, 0, 1, 1], [], []>} : vector<2x32xf32>, vector<32x128xf32>, vector<2x128xf32> -> vector<2x128xf32>
    %171 = arith.addf %169, %170 : vector<2x128xf32>
    %172 = arith.negf %171 : vector<2x128xf32>
    %173 = math.exp %172 : vector<2x128xf32>
    %cst_44 = arith.constant 1.000000e+00 : f32
    %174 = vector.broadcast %cst_44 : f32 to vector<2x128xf32>
    %175 = arith.addf %174, %173 : vector<2x128xf32>
    %176 = arith.divf %174, %175 : vector<2x128xf32>
    %177 = math.tanh %171 : vector<2x128xf32>
    %178 = vector.extract_strided_slice %176 {offsets = [0, 0], sizes = [2, 32], strides = [1, 1]} : vector<2x128xf32> to vector<2x32xf32>
    %179 = vector.extract_strided_slice %176 {offsets = [0, 32], sizes = [2, 32], strides = [1, 1]} : vector<2x128xf32> to vector<2x32xf32>
    %180 = vector.extract_strided_slice %177 {offsets = [0, 64], sizes = [2, 32], strides = [1, 1]} : vector<2x128xf32> to vector<2x32xf32>
    %181 = vector.extract_strided_slice %176 {offsets = [0, 96], sizes = [2, 32], strides = [1, 1]} : vector<2x128xf32> to vector<2x32xf32>
    %182 = arith.mulf %179, %168 : vector<2x32xf32>
    %183 = arith.mulf %178, %180 : vector<2x32xf32>
    %184 = arith.addf %182, %183 : vector<2x32xf32>
    %185 = math.tanh %184 : vector<2x32xf32>
    %186 = arith.mulf %181, %185 : vector<2x32xf32>
    %c14_45 = arith.constant 14 : index
    %c32 = arith.constant 32 : index
    %187 = vector.load %arg16[%c14_45, %c32] : memref<16x64xf32, #tpu.memory_space<vmem>>, vector<2x32xf32>
    tpu.vector_store %arg16[%c14_45, %c32], %186 {strides = array<i32>} : memref<16x64xf32, #tpu.memory_space<vmem>>, vector<2x32xf32>,
    %188 = vector.extract_strided_slice %12 {offsets = [12, 0], sizes = [2, 128], strides = [1, 1]} : vector<16x128xf32> to vector<2x128xf32>
    %cst_46 = arith.constant dense<0.000000e+00> : vector<2x128xf32>
    %189 = tpu.matmul %186, %4, %cst_46 {dimension_numbers = #tpu.dot_dimension_numbers<[1], [0], [0], [1], [0, 0, 1, 1], [], []>} : vector<2x32xf32>, vector<32x128xf32>, vector<2x128xf32> -> vector<2x128xf32>
    %190 = arith.addf %188, %189 : vector<2x128xf32>
    %191 = arith.negf %190 : vector<2x128xf32>
    %192 = math.exp %191 : vector<2x128xf32>
    %cst_47 = arith.constant 1.000000e+00 : f32
    %193 = vector.broadcast %cst_47 : f32 to vector<2x128xf32>
    %194 = arith.addf %193, %192 : vector<2x128xf32>
    %195 = arith.divf %193, %194 : vector<2x128xf32>
    %196 = math.tanh %190 : vector<2x128xf32>
    %197 = vector.extract_strided_slice %195 {offsets = [0, 0], sizes = [2, 32], strides = [1, 1]} : vector<2x128xf32> to vector<2x32xf32>
    %198 = vector.extract_strided_slice %195 {offsets = [0, 32], sizes = [2, 32], strides = [1, 1]} : vector<2x128xf32> to vector<2x32xf32>
    %199 = vector.extract_strided_slice %196 {offsets = [0, 64], sizes = [2, 32], strides = [1, 1]} : vector<2x128xf32> to vector<2x32xf32>
    %200 = vector.extract_strided_slice %195 {offsets = [0, 96], sizes = [2, 32], strides = [1, 1]} : vector<2x128xf32> to vector<2x32xf32>
    %201 = arith.mulf %198, %184 : vector<2x32xf32>
    %202 = arith.mulf %197, %199 : vector<2x32xf32>
    %203 = arith.addf %201, %202 : vector<2x32xf32>
    %204 = math.tanh %203 : vector<2x32xf32>
    %205 = arith.mulf %200, %204 : vector<2x32xf32>
    %c12_48 = arith.constant 12 : index
    %c32_49 = arith.constant 32 : index
    %206 = vector.load %arg16[%c12_48, %c32_49] : memref<16x64xf32, #tpu.memory_space<vmem>>, vector<2x32xf32>
    tpu.vector_store %arg16[%c12_48, %c32_49], %205 {strides = array<i32>} : memref<16x64xf32, #tpu.memory_space<vmem>>, vector<2x32xf32>,
    %207 = vector.extract_strided_slice %12 {offsets = [10, 0], sizes = [2, 128], strides = [1, 1]} : vector<16x128xf32> to vector<2x128xf32>
    %cst_50 = arith.constant dense<0.000000e+00> : vector<2x128xf32>
    %208 = tpu.matmul %205, %4, %cst_50 {dimension_numbers = #tpu.dot_dimension_numbers<[1], [0], [0], [1], [0, 0, 1, 1], [], []>} : vector<2x32xf32>, vector<32x128xf32>, vector<2x128xf32> -> vector<2x128xf32>
    %209 = arith.addf %207, %208 : vector<2x128xf32>
    %210 = arith.negf %209 : vector<2x128xf32>
    %211 = math.exp %210 : vector<2x128xf32>
    %cst_51 = arith.constant 1.000000e+00 : f32
    %212 = vector.broadcast %cst_51 : f32 to vector<2x128xf32>
    %213 = arith.addf %212, %211 : vector<2x128xf32>
    %214 = arith.divf %212, %213 : vector<2x128xf32>
    %215 = math.tanh %209 : vector<2x128xf32>
    %216 = vector.extract_strided_slice %214 {offsets = [0, 0], sizes = [2, 32], strides = [1, 1]} : vector<2x128xf32> to vector<2x32xf32>
    %217 = vector.extract_strided_slice %214 {offsets = [0, 32], sizes = [2, 32], strides = [1, 1]} : vector<2x128xf32> to vector<2x32xf32>
    %218 = vector.extract_strided_slice %215 {offsets = [0, 64], sizes = [2, 32], strides = [1, 1]} : vector<2x128xf32> to vector<2x32xf32>
    %219 = vector.extract_strided_slice %214 {offsets = [0, 96], sizes = [2, 32], strides = [1, 1]} : vector<2x128xf32> to vector<2x32xf32>
    %220 = arith.mulf %217, %203 : vector<2x32xf32>
    %221 = arith.mulf %216, %218 : vector<2x32xf32>
    %222 = arith.addf %220, %221 : vector<2x32xf32>
    %223 = math.tanh %222 : vector<2x32xf32>
    %224 = arith.mulf %219, %223 : vector<2x32xf32>
    %c10_52 = arith.constant 10 : index
    %c32_53 = arith.constant 32 : index
    %225 = vector.load %arg16[%c10_52, %c32_53] : memref<16x64xf32, #tpu.memory_space<vmem>>, vector<2x32xf32>
    tpu.vector_store %arg16[%c10_52, %c32_53], %224 {strides = array<i32>} : memref<16x64xf32, #tpu.memory_space<vmem>>, vector<2x32xf32>,
    %226 = vector.extract_strided_slice %12 {offsets = [8, 0], sizes = [2, 128], strides = [1, 1]} : vector<16x128xf32> to vector<2x128xf32>
    %cst_54 = arith.constant dense<0.000000e+00> : vector<2x128xf32>
    %227 = tpu.matmul %224, %4, %cst_54 {dimension_numbers = #tpu.dot_dimension_numbers<[1], [0], [0], [1], [0, 0, 1, 1], [], []>} : vector<2x32xf32>, vector<32x128xf32>, vector<2x128xf32> -> vector<2x128xf32>
    %228 = arith.addf %226, %227 : vector<2x128xf32>
    %229 = arith.negf %228 : vector<2x128xf32>
    %230 = math.exp %229 : vector<2x128xf32>
    %cst_55 = arith.constant 1.000000e+00 : f32
    %231 = vector.broadcast %cst_55 : f32 to vector<2x128xf32>
    %232 = arith.addf %231, %230 : vector<2x128xf32>
    %233 = arith.divf %231, %232 : vector<2x128xf32>
    %234 = math.tanh %228 : vector<2x128xf32>
    %235 = vector.extract_strided_slice %233 {offsets = [0, 0], sizes = [2, 32], strides = [1, 1]} : vector<2x128xf32> to vector<2x32xf32>
    %236 = vector.extract_strided_slice %233 {offsets = [0, 32], sizes = [2, 32], strides = [1, 1]} : vector<2x128xf32> to vector<2x32xf32>
    %237 = vector.extract_strided_slice %234 {offsets = [0, 64], sizes = [2, 32], strides = [1, 1]} : vector<2x128xf32> to vector<2x32xf32>
    %238 = vector.extract_strided_slice %233 {offsets = [0, 96], sizes = [2, 32], strides = [1, 1]} : vector<2x128xf32> to vector<2x32xf32>
    %239 = arith.mulf %236, %222 : vector<2x32xf32>
    %240 = arith.mulf %235, %237 : vector<2x32xf32>
    %241 = arith.addf %239, %240 : vector<2x32xf32>
    %242 = math.tanh %241 : vector<2x32xf32>
    %243 = arith.mulf %238, %242 : vector<2x32xf32>
    %c8_56 = arith.constant 8 : index
    %c32_57 = arith.constant 32 : index
    %244 = vector.load %arg16[%c8_56, %c32_57] : memref<16x64xf32, #tpu.memory_space<vmem>>, vector<2x32xf32>
    tpu.vector_store %arg16[%c8_56, %c32_57], %243 {strides = array<i32>} : memref<16x64xf32, #tpu.memory_space<vmem>>, vector<2x32xf32>,
    %245 = vector.extract_strided_slice %12 {offsets = [6, 0], sizes = [2, 128], strides = [1, 1]} : vector<16x128xf32> to vector<2x128xf32>
    %cst_58 = arith.constant dense<0.000000e+00> : vector<2x128xf32>
    %246 = tpu.matmul %243, %4, %cst_58 {dimension_numbers = #tpu.dot_dimension_numbers<[1], [0], [0], [1], [0, 0, 1, 1], [], []>} : vector<2x32xf32>, vector<32x128xf32>, vector<2x128xf32> -> vector<2x128xf32>
    %247 = arith.addf %245, %246 : vector<2x128xf32>
    %248 = arith.negf %247 : vector<2x128xf32>
    %249 = math.exp %248 : vector<2x128xf32>
    %cst_59 = arith.constant 1.000000e+00 : f32
    %250 = vector.broadcast %cst_59 : f32 to vector<2x128xf32>
    %251 = arith.addf %250, %249 : vector<2x128xf32>
    %252 = arith.divf %250, %251 : vector<2x128xf32>
    %253 = math.tanh %247 : vector<2x128xf32>
    %254 = vector.extract_strided_slice %252 {offsets = [0, 0], sizes = [2, 32], strides = [1, 1]} : vector<2x128xf32> to vector<2x32xf32>
    %255 = vector.extract_strided_slice %252 {offsets = [0, 32], sizes = [2, 32], strides = [1, 1]} : vector<2x128xf32> to vector<2x32xf32>
    %256 = vector.extract_strided_slice %253 {offsets = [0, 64], sizes = [2, 32], strides = [1, 1]} : vector<2x128xf32> to vector<2x32xf32>
    %257 = vector.extract_strided_slice %252 {offsets = [0, 96], sizes = [2, 32], strides = [1, 1]} : vector<2x128xf32> to vector<2x32xf32>
    %258 = arith.mulf %255, %241 : vector<2x32xf32>
    %259 = arith.mulf %254, %256 : vector<2x32xf32>
    %260 = arith.addf %258, %259 : vector<2x32xf32>
    %261 = math.tanh %260 : vector<2x32xf32>
    %262 = arith.mulf %257, %261 : vector<2x32xf32>
    %c6_60 = arith.constant 6 : index
    %c32_61 = arith.constant 32 : index
    %263 = vector.load %arg16[%c6_60, %c32_61] : memref<16x64xf32, #tpu.memory_space<vmem>>, vector<2x32xf32>
    tpu.vector_store %arg16[%c6_60, %c32_61], %262 {strides = array<i32>} : memref<16x64xf32, #tpu.memory_space<vmem>>, vector<2x32xf32>,
    %264 = vector.extract_strided_slice %12 {offsets = [4, 0], sizes = [2, 128], strides = [1, 1]} : vector<16x128xf32> to vector<2x128xf32>
    %cst_62 = arith.constant dense<0.000000e+00> : vector<2x128xf32>
    %265 = tpu.matmul %262, %4, %cst_62 {dimension_numbers = #tpu.dot_dimension_numbers<[1], [0], [0], [1], [0, 0, 1, 1], [], []>} : vector<2x32xf32>, vector<32x128xf32>, vector<2x128xf32> -> vector<2x128xf32>
    %266 = arith.addf %264, %265 : vector<2x128xf32>
    %267 = arith.negf %266 : vector<2x128xf32>
    %268 = math.exp %267 : vector<2x128xf32>
    %cst_63 = arith.constant 1.000000e+00 : f32
    %269 = vector.broadcast %cst_63 : f32 to vector<2x128xf32>
    %270 = arith.addf %269, %268 : vector<2x128xf32>
    %271 = arith.divf %269, %270 : vector<2x128xf32>
    %272 = math.tanh %266 : vector<2x128xf32>
    %273 = vector.extract_strided_slice %271 {offsets = [0, 0], sizes = [2, 32], strides = [1, 1]} : vector<2x128xf32> to vector<2x32xf32>
    %274 = vector.extract_strided_slice %271 {offsets = [0, 32], sizes = [2, 32], strides = [1, 1]} : vector<2x128xf32> to vector<2x32xf32>
    %275 = vector.extract_strided_slice %272 {offsets = [0, 64], sizes = [2, 32], strides = [1, 1]} : vector<2x128xf32> to vector<2x32xf32>
    %276 = vector.extract_strided_slice %271 {offsets = [0, 96], sizes = [2, 32], strides = [1, 1]} : vector<2x128xf32> to vector<2x32xf32>
    %277 = arith.mulf %274, %260 : vector<2x32xf32>
    %278 = arith.mulf %273, %275 : vector<2x32xf32>
    %279 = arith.addf %277, %278 : vector<2x32xf32>
    %280 = math.tanh %279 : vector<2x32xf32>
    %281 = arith.mulf %276, %280 : vector<2x32xf32>
    %c4_64 = arith.constant 4 : index
    %c32_65 = arith.constant 32 : index
    %282 = vector.load %arg16[%c4_64, %c32_65] : memref<16x64xf32, #tpu.memory_space<vmem>>, vector<2x32xf32>
    tpu.vector_store %arg16[%c4_64, %c32_65], %281 {strides = array<i32>} : memref<16x64xf32, #tpu.memory_space<vmem>>, vector<2x32xf32>,
    %283 = vector.extract_strided_slice %12 {offsets = [2, 0], sizes = [2, 128], strides = [1, 1]} : vector<16x128xf32> to vector<2x128xf32>
    %cst_66 = arith.constant dense<0.000000e+00> : vector<2x128xf32>
    %284 = tpu.matmul %281, %4, %cst_66 {dimension_numbers = #tpu.dot_dimension_numbers<[1], [0], [0], [1], [0, 0, 1, 1], [], []>} : vector<2x32xf32>, vector<32x128xf32>, vector<2x128xf32> -> vector<2x128xf32>
    %285 = arith.addf %283, %284 : vector<2x128xf32>
    %286 = arith.negf %285 : vector<2x128xf32>
    %287 = math.exp %286 : vector<2x128xf32>
    %cst_67 = arith.constant 1.000000e+00 : f32
    %288 = vector.broadcast %cst_67 : f32 to vector<2x128xf32>
    %289 = arith.addf %288, %287 : vector<2x128xf32>
    %290 = arith.divf %288, %289 : vector<2x128xf32>
    %291 = math.tanh %285 : vector<2x128xf32>
    %292 = vector.extract_strided_slice %290 {offsets = [0, 0], sizes = [2, 32], strides = [1, 1]} : vector<2x128xf32> to vector<2x32xf32>
    %293 = vector.extract_strided_slice %290 {offsets = [0, 32], sizes = [2, 32], strides = [1, 1]} : vector<2x128xf32> to vector<2x32xf32>
    %294 = vector.extract_strided_slice %291 {offsets = [0, 64], sizes = [2, 32], strides = [1, 1]} : vector<2x128xf32> to vector<2x32xf32>
    %295 = vector.extract_strided_slice %290 {offsets = [0, 96], sizes = [2, 32], strides = [1, 1]} : vector<2x128xf32> to vector<2x32xf32>
    %296 = arith.mulf %293, %279 : vector<2x32xf32>
    %297 = arith.mulf %292, %294 : vector<2x32xf32>
    %298 = arith.addf %296, %297 : vector<2x32xf32>
    %299 = math.tanh %298 : vector<2x32xf32>
    %300 = arith.mulf %295, %299 : vector<2x32xf32>
    %c2_68 = arith.constant 2 : index
    %c32_69 = arith.constant 32 : index
    %301 = vector.load %arg16[%c2_68, %c32_69] : memref<16x64xf32, #tpu.memory_space<vmem>>, vector<2x32xf32>
    tpu.vector_store %arg16[%c2_68, %c32_69], %300 {strides = array<i32>} : memref<16x64xf32, #tpu.memory_space<vmem>>, vector<2x32xf32>,
    %302 = vector.extract_strided_slice %12 {offsets = [0, 0], sizes = [2, 128], strides = [1, 1]} : vector<16x128xf32> to vector<2x128xf32>
    %cst_70 = arith.constant dense<0.000000e+00> : vector<2x128xf32>
    %303 = tpu.matmul %300, %4, %cst_70 {dimension_numbers = #tpu.dot_dimension_numbers<[1], [0], [0], [1], [0, 0, 1, 1], [], []>} : vector<2x32xf32>, vector<32x128xf32>, vector<2x128xf32> -> vector<2x128xf32>
    %304 = arith.addf %302, %303 : vector<2x128xf32>
    %305 = arith.negf %304 : vector<2x128xf32>
    %306 = math.exp %305 : vector<2x128xf32>
    %cst_71 = arith.constant 1.000000e+00 : f32
    %307 = vector.broadcast %cst_71 : f32 to vector<2x128xf32>
    %308 = arith.addf %307, %306 : vector<2x128xf32>
    %309 = arith.divf %307, %308 : vector<2x128xf32>
    %310 = math.tanh %304 : vector<2x128xf32>
    %311 = vector.extract_strided_slice %309 {offsets = [0, 0], sizes = [2, 32], strides = [1, 1]} : vector<2x128xf32> to vector<2x32xf32>
    %312 = vector.extract_strided_slice %309 {offsets = [0, 32], sizes = [2, 32], strides = [1, 1]} : vector<2x128xf32> to vector<2x32xf32>
    %313 = vector.extract_strided_slice %310 {offsets = [0, 64], sizes = [2, 32], strides = [1, 1]} : vector<2x128xf32> to vector<2x32xf32>
    %314 = vector.extract_strided_slice %309 {offsets = [0, 96], sizes = [2, 32], strides = [1, 1]} : vector<2x128xf32> to vector<2x32xf32>
    %315 = arith.mulf %312, %298 : vector<2x32xf32>
    %316 = arith.mulf %311, %313 : vector<2x32xf32>
    %317 = arith.addf %315, %316 : vector<2x32xf32>
    %318 = math.tanh %317 : vector<2x32xf32>
    %319 = arith.mulf %314, %318 : vector<2x32xf32>
    %c0_72 = arith.constant 0 : index
    %c32_73 = arith.constant 32 : index
    %320 = vector.load %arg16[%c0_72, %c32_73] : memref<16x64xf32, #tpu.memory_space<vmem>>, vector<2x32xf32>
    tpu.vector_store %arg16[%c0_72, %c32_73], %319 {strides = array<i32>} : memref<16x64xf32, #tpu.memory_space<vmem>>, vector<2x32xf32>,
    %c0_74 = arith.constant 0 : index
    %c0_75 = arith.constant 0 : index
    %321 = vector.load %arg7[%c0_74, %c0_75] : memref<64x128xf32, #tpu.memory_space<vmem>>, vector<64x128xf32>
    %c0_76 = arith.constant 0 : index
    %c0_77 = arith.constant 0 : index
    %322 = vector.load %arg8[%c0_76, %c0_77] : memref<32x128xf32, #tpu.memory_space<vmem>>, vector<32x128xf32>
    %c0_78 = arith.constant 0 : index
    %c0_79 = arith.constant 0 : index
    %323 = vector.load %arg9[%c0_78, %c0_79] : memref<1x128xf32, #tpu.memory_space<vmem>>, vector<1x128xf32>
    %c0_80 = arith.constant 0 : index
    %c0_81 = arith.constant 0 : index
    %324 = vector.load %arg10[%c0_80, %c0_81] : memref<64x128xf32, #tpu.memory_space<vmem>>, vector<64x128xf32>
    %c0_82 = arith.constant 0 : index
    %c0_83 = arith.constant 0 : index
    %325 = vector.load %arg12[%c0_82, %c0_83] : memref<1x128xf32, #tpu.memory_space<vmem>>, vector<1x128xf32>
    %c0_84 = arith.constant 0 : index
    %c0_85 = arith.constant 0 : index
    %326 = vector.load %arg16[%c0_84, %c0_85] : memref<16x64xf32, #tpu.memory_space<vmem>>, vector<16x64xf32>
    %cst_86 = arith.constant dense<0.000000e+00> : vector<16x128xf32>
    %327 = tpu.matmul %326, %321, %cst_86 {dimension_numbers = #tpu.dot_dimension_numbers<[1], [0], [0], [1], [0, 0, 1, 1], [], []>} : vector<16x64xf32>, vector<64x128xf32>, vector<16x128xf32> -> vector<16x128xf32>
    %328 = vector.broadcast %323 : vector<1x128xf32> to vector<16x128xf32>
    %329 = arith.addf %327, %328 : vector<16x128xf32>
    %cst_87 = arith.constant dense<0.000000e+00> : vector<16x128xf32>
    %330 = tpu.matmul %326, %324, %cst_87 {dimension_numbers = #tpu.dot_dimension_numbers<[1], [0], [0], [1], [0, 0, 1, 1], [], []>} : vector<16x64xf32>, vector<64x128xf32>, vector<16x128xf32> -> vector<16x128xf32>
    %331 = vector.broadcast %325 : vector<1x128xf32> to vector<16x128xf32>
    %332 = arith.addf %330, %331 : vector<16x128xf32>
    %cst_88 = arith.constant 0.000000e+00 : f32
    %333 = vector.broadcast %cst_88 : f32 to vector<2x32xf32>
    %cst_89 = arith.constant 0.000000e+00 : f32
    %334 = vector.broadcast %cst_89 : f32 to vector<2x32xf32>
    %335 = vector.extract_strided_slice %329 {offsets = [0, 0], sizes = [2, 128], strides = [1, 1]} : vector<16x128xf32> to vector<2x128xf32>
    %cst_90 = arith.constant dense<0.000000e+00> : vector<2x128xf32>
    %336 = tpu.matmul %333, %322, %cst_90 {dimension_numbers = #tpu.dot_dimension_numbers<[1], [0], [0], [1], [0, 0, 1, 1], [], []>} : vector<2x32xf32>, vector<32x128xf32>, vector<2x128xf32> -> vector<2x128xf32>
    %337 = arith.addf %335, %336 : vector<2x128xf32>
    %338 = arith.negf %337 : vector<2x128xf32>
    %339 = math.exp %338 : vector<2x128xf32>
    %cst_91 = arith.constant 1.000000e+00 : f32
    %340 = vector.broadcast %cst_91 : f32 to vector<2x128xf32>
    %341 = arith.addf %340, %339 : vector<2x128xf32>
    %342 = arith.divf %340, %341 : vector<2x128xf32>
    %343 = math.tanh %337 : vector<2x128xf32>
    %344 = vector.extract_strided_slice %342 {offsets = [0, 0], sizes = [2, 32], strides = [1, 1]} : vector<2x128xf32> to vector<2x32xf32>
    %345 = vector.extract_strided_slice %342 {offsets = [0, 32], sizes = [2, 32], strides = [1, 1]} : vector<2x128xf32> to vector<2x32xf32>
    %346 = vector.extract_strided_slice %343 {offsets = [0, 64], sizes = [2, 32], strides = [1, 1]} : vector<2x128xf32> to vector<2x32xf32>
    %347 = vector.extract_strided_slice %342 {offsets = [0, 96], sizes = [2, 32], strides = [1, 1]} : vector<2x128xf32> to vector<2x32xf32>
    %348 = arith.mulf %345, %334 : vector<2x32xf32>
    %349 = arith.mulf %344, %346 : vector<2x32xf32>
    %350 = arith.addf %348, %349 : vector<2x32xf32>
    %351 = math.tanh %350 : vector<2x32xf32>
    %352 = arith.mulf %347, %351 : vector<2x32xf32>
    %353 = vector.extract_strided_slice %329 {offsets = [2, 0], sizes = [2, 128], strides = [1, 1]} : vector<16x128xf32> to vector<2x128xf32>
    %cst_92 = arith.constant dense<0.000000e+00> : vector<2x128xf32>
    %354 = tpu.matmul %352, %322, %cst_92 {dimension_numbers = #tpu.dot_dimension_numbers<[1], [0], [0], [1], [0, 0, 1, 1], [], []>} : vector<2x32xf32>, vector<32x128xf32>, vector<2x128xf32> -> vector<2x128xf32>
    %355 = arith.addf %353, %354 : vector<2x128xf32>
    %356 = arith.negf %355 : vector<2x128xf32>
    %357 = math.exp %356 : vector<2x128xf32>
    %cst_93 = arith.constant 1.000000e+00 : f32
    %358 = vector.broadcast %cst_93 : f32 to vector<2x128xf32>
    %359 = arith.addf %358, %357 : vector<2x128xf32>
    %360 = arith.divf %358, %359 : vector<2x128xf32>
    %361 = math.tanh %355 : vector<2x128xf32>
    %362 = vector.extract_strided_slice %360 {offsets = [0, 0], sizes = [2, 32], strides = [1, 1]} : vector<2x128xf32> to vector<2x32xf32>
    %363 = vector.extract_strided_slice %360 {offsets = [0, 32], sizes = [2, 32], strides = [1, 1]} : vector<2x128xf32> to vector<2x32xf32>
    %364 = vector.extract_strided_slice %361 {offsets = [0, 64], sizes = [2, 32], strides = [1, 1]} : vector<2x128xf32> to vector<2x32xf32>
    %365 = vector.extract_strided_slice %360 {offsets = [0, 96], sizes = [2, 32], strides = [1, 1]} : vector<2x128xf32> to vector<2x32xf32>
    %366 = arith.mulf %363, %350 : vector<2x32xf32>
    %367 = arith.mulf %362, %364 : vector<2x32xf32>
    %368 = arith.addf %366, %367 : vector<2x32xf32>
    %369 = math.tanh %368 : vector<2x32xf32>
    %370 = arith.mulf %365, %369 : vector<2x32xf32>
    %371 = vector.extract_strided_slice %329 {offsets = [4, 0], sizes = [2, 128], strides = [1, 1]} : vector<16x128xf32> to vector<2x128xf32>
    %cst_94 = arith.constant dense<0.000000e+00> : vector<2x128xf32>
    %372 = tpu.matmul %370, %322, %cst_94 {dimension_numbers = #tpu.dot_dimension_numbers<[1], [0], [0], [1], [0, 0, 1, 1], [], []>} : vector<2x32xf32>, vector<32x128xf32>, vector<2x128xf32> -> vector<2x128xf32>
    %373 = arith.addf %371, %372 : vector<2x128xf32>
    %374 = arith.negf %373 : vector<2x128xf32>
    %375 = math.exp %374 : vector<2x128xf32>
    %cst_95 = arith.constant 1.000000e+00 : f32
    %376 = vector.broadcast %cst_95 : f32 to vector<2x128xf32>
    %377 = arith.addf %376, %375 : vector<2x128xf32>
    %378 = arith.divf %376, %377 : vector<2x128xf32>
    %379 = math.tanh %373 : vector<2x128xf32>
    %380 = vector.extract_strided_slice %378 {offsets = [0, 0], sizes = [2, 32], strides = [1, 1]} : vector<2x128xf32> to vector<2x32xf32>
    %381 = vector.extract_strided_slice %378 {offsets = [0, 32], sizes = [2, 32], strides = [1, 1]} : vector<2x128xf32> to vector<2x32xf32>
    %382 = vector.extract_strided_slice %379 {offsets = [0, 64], sizes = [2, 32], strides = [1, 1]} : vector<2x128xf32> to vector<2x32xf32>
    %383 = vector.extract_strided_slice %378 {offsets = [0, 96], sizes = [2, 32], strides = [1, 1]} : vector<2x128xf32> to vector<2x32xf32>
    %384 = arith.mulf %381, %368 : vector<2x32xf32>
    %385 = arith.mulf %380, %382 : vector<2x32xf32>
    %386 = arith.addf %384, %385 : vector<2x32xf32>
    %387 = math.tanh %386 : vector<2x32xf32>
    %388 = arith.mulf %383, %387 : vector<2x32xf32>
    %389 = vector.extract_strided_slice %329 {offsets = [6, 0], sizes = [2, 128], strides = [1, 1]} : vector<16x128xf32> to vector<2x128xf32>
    %cst_96 = arith.constant dense<0.000000e+00> : vector<2x128xf32>
    %390 = tpu.matmul %388, %322, %cst_96 {dimension_numbers = #tpu.dot_dimension_numbers<[1], [0], [0], [1], [0, 0, 1, 1], [], []>} : vector<2x32xf32>, vector<32x128xf32>, vector<2x128xf32> -> vector<2x128xf32>
    %391 = arith.addf %389, %390 : vector<2x128xf32>
    %392 = arith.negf %391 : vector<2x128xf32>
    %393 = math.exp %392 : vector<2x128xf32>
    %cst_97 = arith.constant 1.000000e+00 : f32
    %394 = vector.broadcast %cst_97 : f32 to vector<2x128xf32>
    %395 = arith.addf %394, %393 : vector<2x128xf32>
    %396 = arith.divf %394, %395 : vector<2x128xf32>
    %397 = math.tanh %391 : vector<2x128xf32>
    %398 = vector.extract_strided_slice %396 {offsets = [0, 0], sizes = [2, 32], strides = [1, 1]} : vector<2x128xf32> to vector<2x32xf32>
    %399 = vector.extract_strided_slice %396 {offsets = [0, 32], sizes = [2, 32], strides = [1, 1]} : vector<2x128xf32> to vector<2x32xf32>
    %400 = vector.extract_strided_slice %397 {offsets = [0, 64], sizes = [2, 32], strides = [1, 1]} : vector<2x128xf32> to vector<2x32xf32>
    %401 = vector.extract_strided_slice %396 {offsets = [0, 96], sizes = [2, 32], strides = [1, 1]} : vector<2x128xf32> to vector<2x32xf32>
    %402 = arith.mulf %399, %386 : vector<2x32xf32>
    %403 = arith.mulf %398, %400 : vector<2x32xf32>
    %404 = arith.addf %402, %403 : vector<2x32xf32>
    %405 = math.tanh %404 : vector<2x32xf32>
    %406 = arith.mulf %401, %405 : vector<2x32xf32>
    %407 = vector.extract_strided_slice %329 {offsets = [8, 0], sizes = [2, 128], strides = [1, 1]} : vector<16x128xf32> to vector<2x128xf32>
    %cst_98 = arith.constant dense<0.000000e+00> : vector<2x128xf32>
    %408 = tpu.matmul %406, %322, %cst_98 {dimension_numbers = #tpu.dot_dimension_numbers<[1], [0], [0], [1], [0, 0, 1, 1], [], []>} : vector<2x32xf32>, vector<32x128xf32>, vector<2x128xf32> -> vector<2x128xf32>
    %409 = arith.addf %407, %408 : vector<2x128xf32>
    %410 = arith.negf %409 : vector<2x128xf32>
    %411 = math.exp %410 : vector<2x128xf32>
    %cst_99 = arith.constant 1.000000e+00 : f32
    %412 = vector.broadcast %cst_99 : f32 to vector<2x128xf32>
    %413 = arith.addf %412, %411 : vector<2x128xf32>
    %414 = arith.divf %412, %413 : vector<2x128xf32>
    %415 = math.tanh %409 : vector<2x128xf32>
    %416 = vector.extract_strided_slice %414 {offsets = [0, 0], sizes = [2, 32], strides = [1, 1]} : vector<2x128xf32> to vector<2x32xf32>
    %417 = vector.extract_strided_slice %414 {offsets = [0, 32], sizes = [2, 32], strides = [1, 1]} : vector<2x128xf32> to vector<2x32xf32>
    %418 = vector.extract_strided_slice %415 {offsets = [0, 64], sizes = [2, 32], strides = [1, 1]} : vector<2x128xf32> to vector<2x32xf32>
    %419 = vector.extract_strided_slice %414 {offsets = [0, 96], sizes = [2, 32], strides = [1, 1]} : vector<2x128xf32> to vector<2x32xf32>
    %420 = arith.mulf %417, %404 : vector<2x32xf32>
    %421 = arith.mulf %416, %418 : vector<2x32xf32>
    %422 = arith.addf %420, %421 : vector<2x32xf32>
    %423 = math.tanh %422 : vector<2x32xf32>
    %424 = arith.mulf %419, %423 : vector<2x32xf32>
    %425 = vector.extract_strided_slice %329 {offsets = [10, 0], sizes = [2, 128], strides = [1, 1]} : vector<16x128xf32> to vector<2x128xf32>
    %cst_100 = arith.constant dense<0.000000e+00> : vector<2x128xf32>
    %426 = tpu.matmul %424, %322, %cst_100 {dimension_numbers = #tpu.dot_dimension_numbers<[1], [0], [0], [1], [0, 0, 1, 1], [], []>} : vector<2x32xf32>, vector<32x128xf32>, vector<2x128xf32> -> vector<2x128xf32>
    %427 = arith.addf %425, %426 : vector<2x128xf32>
    %428 = arith.negf %427 : vector<2x128xf32>
    %429 = math.exp %428 : vector<2x128xf32>
    %cst_101 = arith.constant 1.000000e+00 : f32
    %430 = vector.broadcast %cst_101 : f32 to vector<2x128xf32>
    %431 = arith.addf %430, %429 : vector<2x128xf32>
    %432 = arith.divf %430, %431 : vector<2x128xf32>
    %433 = math.tanh %427 : vector<2x128xf32>
    %434 = vector.extract_strided_slice %432 {offsets = [0, 0], sizes = [2, 32], strides = [1, 1]} : vector<2x128xf32> to vector<2x32xf32>
    %435 = vector.extract_strided_slice %432 {offsets = [0, 32], sizes = [2, 32], strides = [1, 1]} : vector<2x128xf32> to vector<2x32xf32>
    %436 = vector.extract_strided_slice %433 {offsets = [0, 64], sizes = [2, 32], strides = [1, 1]} : vector<2x128xf32> to vector<2x32xf32>
    %437 = vector.extract_strided_slice %432 {offsets = [0, 96], sizes = [2, 32], strides = [1, 1]} : vector<2x128xf32> to vector<2x32xf32>
    %438 = arith.mulf %435, %422 : vector<2x32xf32>
    %439 = arith.mulf %434, %436 : vector<2x32xf32>
    %440 = arith.addf %438, %439 : vector<2x32xf32>
    %441 = math.tanh %440 : vector<2x32xf32>
    %442 = arith.mulf %437, %441 : vector<2x32xf32>
    %443 = vector.extract_strided_slice %329 {offsets = [12, 0], sizes = [2, 128], strides = [1, 1]} : vector<16x128xf32> to vector<2x128xf32>
    %cst_102 = arith.constant dense<0.000000e+00> : vector<2x128xf32>
    %444 = tpu.matmul %442, %322, %cst_102 {dimension_numbers = #tpu.dot_dimension_numbers<[1], [0], [0], [1], [0, 0, 1, 1], [], []>} : vector<2x32xf32>, vector<32x128xf32>, vector<2x128xf32> -> vector<2x128xf32>
    %445 = arith.addf %443, %444 : vector<2x128xf32>
    %446 = arith.negf %445 : vector<2x128xf32>
    %447 = math.exp %446 : vector<2x128xf32>
    %cst_103 = arith.constant 1.000000e+00 : f32
    %448 = vector.broadcast %cst_103 : f32 to vector<2x128xf32>
    %449 = arith.addf %448, %447 : vector<2x128xf32>
    %450 = arith.divf %448, %449 : vector<2x128xf32>
    %451 = math.tanh %445 : vector<2x128xf32>
    %452 = vector.extract_strided_slice %450 {offsets = [0, 0], sizes = [2, 32], strides = [1, 1]} : vector<2x128xf32> to vector<2x32xf32>
    %453 = vector.extract_strided_slice %450 {offsets = [0, 32], sizes = [2, 32], strides = [1, 1]} : vector<2x128xf32> to vector<2x32xf32>
    %454 = vector.extract_strided_slice %451 {offsets = [0, 64], sizes = [2, 32], strides = [1, 1]} : vector<2x128xf32> to vector<2x32xf32>
    %455 = vector.extract_strided_slice %450 {offsets = [0, 96], sizes = [2, 32], strides = [1, 1]} : vector<2x128xf32> to vector<2x32xf32>
    %456 = arith.mulf %453, %440 : vector<2x32xf32>
    %457 = arith.mulf %452, %454 : vector<2x32xf32>
    %458 = arith.addf %456, %457 : vector<2x32xf32>
    %459 = math.tanh %458 : vector<2x32xf32>
    %460 = arith.mulf %455, %459 : vector<2x32xf32>
    %461 = vector.extract_strided_slice %329 {offsets = [14, 0], sizes = [2, 128], strides = [1, 1]} : vector<16x128xf32> to vector<2x128xf32>
    %cst_104 = arith.constant dense<0.000000e+00> : vector<2x128xf32>
    %462 = tpu.matmul %460, %322, %cst_104 {dimension_numbers = #tpu.dot_dimension_numbers<[1], [0], [0], [1], [0, 0, 1, 1], [], []>} : vector<2x32xf32>, vector<32x128xf32>, vector<2x128xf32> -> vector<2x128xf32>
    %463 = arith.addf %461, %462 : vector<2x128xf32>
    %464 = arith.negf %463 : vector<2x128xf32>
    %465 = math.exp %464 : vector<2x128xf32>
    %cst_105 = arith.constant 1.000000e+00 : f32
    %466 = vector.broadcast %cst_105 : f32 to vector<2x128xf32>
    %467 = arith.addf %466, %465 : vector<2x128xf32>
    %468 = arith.divf %466, %467 : vector<2x128xf32>
    %469 = math.tanh %463 : vector<2x128xf32>
    %470 = vector.extract_strided_slice %468 {offsets = [0, 0], sizes = [2, 32], strides = [1, 1]} : vector<2x128xf32> to vector<2x32xf32>
    %471 = vector.extract_strided_slice %468 {offsets = [0, 32], sizes = [2, 32], strides = [1, 1]} : vector<2x128xf32> to vector<2x32xf32>
    %472 = vector.extract_strided_slice %469 {offsets = [0, 64], sizes = [2, 32], strides = [1, 1]} : vector<2x128xf32> to vector<2x32xf32>
    %473 = vector.extract_strided_slice %468 {offsets = [0, 96], sizes = [2, 32], strides = [1, 1]} : vector<2x128xf32> to vector<2x32xf32>
    %474 = arith.mulf %471, %458 : vector<2x32xf32>
    %475 = arith.mulf %470, %472 : vector<2x32xf32>
    %476 = arith.addf %474, %475 : vector<2x32xf32>
    %477 = math.tanh %476 : vector<2x32xf32>
    %478 = arith.mulf %473, %477 : vector<2x32xf32>
    %479 = vector.extract_strided_slice %332 {offsets = [14, 0], sizes = [2, 128], strides = [1, 1]} : vector<16x128xf32> to vector<2x128xf32>
    %480 = arith.negf %479 : vector<2x128xf32>
    %481 = math.exp %480 : vector<2x128xf32>
    %cst_106 = arith.constant 1.000000e+00 : f32
    %482 = vector.broadcast %cst_106 : f32 to vector<2x128xf32>
    %483 = arith.addf %482, %481 : vector<2x128xf32>
    %484 = arith.divf %482, %483 : vector<2x128xf32>
    %485 = math.tanh %479 : vector<2x128xf32>
    %486 = vector.extract_strided_slice %484 {offsets = [0, 0], sizes = [2, 32], strides = [1, 1]} : vector<2x128xf32> to vector<2x32xf32>
    %487 = vector.extract_strided_slice %485 {offsets = [0, 64], sizes = [2, 32], strides = [1, 1]} : vector<2x128xf32> to vector<2x32xf32>
    %488 = arith.mulf %486, %487 : vector<2x32xf32>
    %489 = vector.extract_strided_slice %484 {offsets = [0, 96], sizes = [2, 32], strides = [1, 1]} : vector<2x128xf32> to vector<2x32xf32>
    %490 = math.tanh %488 : vector<2x32xf32>
    %491 = arith.mulf %489, %490 : vector<2x32xf32>
    %c0_107 = arith.constant 0 : index
    %c0_108 = arith.constant 0 : index
    %492 = vector.load %arg13[%c0_107, %c0_108] : memref<64x5xf32, #tpu.memory_space<vmem>>, vector<32x5xf32>
    %cst_109 = arith.constant dense<0.000000e+00> : vector<2x5xf32>
    %493 = tpu.matmul %478, %492, %cst_109 {dimension_numbers = #tpu.dot_dimension_numbers<[1], [0], [0], [1], [0, 0, 1, 1], [], []>} : vector<2x32xf32>, vector<32x5xf32>, vector<2x5xf32> -> vector<2x5xf32>
    %c32_110 = arith.constant 32 : index
    %c0_111 = arith.constant 0 : index
    %494 = vector.load %arg13[%c32_110, %c0_111] : memref<64x5xf32, #tpu.memory_space<vmem>>, vector<32x5xf32>
    %cst_112 = arith.constant dense<0.000000e+00> : vector<2x5xf32>
    %495 = tpu.matmul %491, %494, %cst_112 {dimension_numbers = #tpu.dot_dimension_numbers<[1], [0], [0], [1], [0, 0, 1, 1], [], []>} : vector<2x32xf32>, vector<32x5xf32>, vector<2x5xf32> -> vector<2x5xf32>
    %496 = arith.addf %493, %495 : vector<2x5xf32>
    %c0_113 = arith.constant 0 : index
    %c0_114 = arith.constant 0 : index
    %497 = vector.load %arg14[%c0_113, %c0_114] : memref<1x5xf32, #tpu.memory_space<vmem>>, vector<1x5xf32>
    %498 = vector.broadcast %497 : vector<1x5xf32> to vector<2x5xf32>
    %499 = arith.addf %496, %498 : vector<2x5xf32>
    %c0_115 = arith.constant 0 : index
    %c0_116 = arith.constant 0 : index
    %500 = vector.load %arg15[%c0_115, %c0_116] : memref<2x5xf32, #tpu.memory_space<vmem>>, vector<2x5xf32>
    tpu.vector_store %arg15[%c0_115, %c0_116], %499 {strides = array<i32>} : memref<2x5xf32, #tpu.memory_space<vmem>>, vector<2x5xf32>,
    return
  }
}

</mosaic_0001>

<bundles_post_ra>
// kernel: text_rnn_forward.1
= control target key start
LH: loop header
LB: loop body
LE: loop exit
PB: predicated region body
PF: predicated region fallthrough
CT: control target
= control target key end

     0   :  { %vm73_vm0 = vcmask 130048   ;;  %s4868_s0 = inlined_call_operand.vmem [shape: f32[16,16], index: 0, kind: input, shape index: {}]   ;;  %s4869_s1 = inlined_call_operand.vmem [shape: f32[16,128], index: 1, kind: input, shape index: {}]   ;;  %s4870_s2 = inlined_call_operand.vmem [shape: f32[32,128], index: 2, kind: input, shape index: {}]   ;;  %s4871_s3 = inlined_call_operand.vmem [shape: f32[1,128], index: 3, kind: input, shape index: {}]   ;;  %s4872_s4 = inlined_call_operand.vmem [shape: f32[16,128], index: 4, kind: input, shape index: {}]   ;;  %s4873_s5 = inlined_call_operand.vmem [shape: f32[32,128], index: 5, kind: input, shape index: {}]   ;;  %s4874_s6 = inlined_call_operand.vmem [shape: f32[1,128], index: 6, kind: input, shape index: {}]   ;;  %s4875_s7 = inlined_call_operand.vmem [shape: f32[64,128], index: 7, kind: input, shape index: {}]   ;;  %s4876_s8 = inlined_call_operand.vmem [shape: f32[32,128], index: 8, kind: input, shape index: {}]   ;;  %s4877_s9 = inlined_call_operand.vmem [shape: f32[1,128], index: 9, kind: input, shape index: {}]   ;;  %s4878_s10 = inlined_call_operand.vmem [shape: f32[64,128], index: 10, kind: input, shape index: {}]   ;;  %s4879_s11 = inlined_call_operand.vmem [shape: f32[32,128], index: 11, kind: input, shape index: {}]   ;;  %s4880_s12 = inlined_call_operand.vmem [shape: f32[1,128], index: 12, kind: input, shape index: {}]   ;;  %s4881_s13 = inlined_call_operand.vmem [shape: f32[64,5], index: 13, kind: input, shape index: {}]   ;;  %s4882_s14 = inlined_call_operand.vmem [shape: f32[1,5], index: 14, kind: input, shape index: {}]   ;;  %s4883_s15 = inlined_call_operand.hbm [shape: f32[2,5], index: 15, kind: output, shape index: {}]  }
   0x1   :  { %v51_v0 = vld [vmem:[%s4869_s1] sm:$0xff]  ;;  %v52_v1 = vld [vmem:[%s4869_s1 + $0x8] sm:$0xff] }
   0x2   :  { %v65_v2 = vld [vmem:[%s4868_s0] sm:$0xff]  ;;  %v3779_v3 = vpack.c.bf16 %v52_v1, %v51_v0  ;;  %v54_v5 = vld [vmem:[%s4870_s2 + $0x8] sm:$0xff] }
   0x3   :  { %3445 = vmatprep.mubr.msk.f32.mxu0 %vm73_vm0, %v65_v2  ;;  %v53_v4 = vld [vmem:[%s4870_s2] sm:$0xff]  ;;  %3452 = vmatprep.mubr.msk.f32.mxu1 %vm73_vm0, %v65_v2 }
   0x4   :  { %20 = vsyncpa [#allocation4], 0  ;;  %3780 = vmatprep.subr.bf16.mxu0 %v3779_v3  ;;  %v66_v6 = vld [vmem:[%s4868_s0 + $0x8] sm:$0xff]  ;;  %v4313_v7 = vpack.c.bf16 %v54_v5, %v53_v4  ;;  %v4206_v8 = vmov 0.0|0.0   ;;  %v55_v9 = vld [vmem:[%s4870_s2 + $0x10] sm:$0xff]  ;;  %vm4207_vm1 = vmmov 0  }
   0x5   :  { %3782 = vmatpush3.bf16.msra.mxu0 %v3779_v3  ;;  %v56_v10 = vld [vmem:[%s4870_s2 + $0x18] sm:$0xff]  ;;  %v4208_v12 = vmov 0.0   ;;  %v3222_v13 = vld [vmem:[%s4871_s3] ss:$0 sm:$0xff]  ;;  %s4209_s17 = smov 64   ;;  %s4210_s3 = smov 32  }
   0x6   :  { %3787 = vmatprep.subr.bf16.mxu0 %v4206_v8  ;;  %v4324_v11 = vpack.c.bf16 %v56_v10, %v55_v9  ;;  %v58_v31 = vld [vmem:[%s4872_s4] sm:$0xff]  ;;  %v59_v32 = vld [vmem:[%s4872_s4 + $0x8] sm:$0xff]  ;;  %vm236_vm2 = vcmask 261120   ;;  %vm339_vm3 = vcmask 254976   ;;  %vm448_vm4 = vcmask 257026   ;;  %s4211_s28 = smov 96  }
   0x7   :  { %v3783_v33 = vpack.c.bf16 %v59_v32, %v58_v31  ;;  %v4367_v37 = vld [vmem:[%s4874_s6] ss:$0 sm:$0xff]  ;;  %vm672_vm5 = vcmask 261126   ;;  %vm560_vm6 = vcmask 259076   ;;  %vm1214_vm7 = vcmask 523526   ;;  %s4212_s11 = smov [#allocation3]  }
   0x8   :  { %3446 = vmatmul.mubr.msk.f32.vlgmr.msra.gmra.mrb[0].mxu0 %vm73_vm0, %v66_v6  ;;  %vm1438_vm8 = vcmask 519426   ;;  %vm1326_vm9 = vcmask 521476   ;;  %vm1547_vm10 = vcmask 517376   ;;  %vm2019_vm11 = vcmask 523264   ;;  %s3214_s6 = sshll.u32 %s4212_s11, 4  ;;  %s3215_s6 = int_to_ptr.vmem [resolvable:$true] %s3214_s6 }
   0x9   :  { %3789 = vmatpush3.bf16.msra.mxu0 %v4313_v7  ;;  %3463 = vmatprep.mubr.msk.f32.mxu0 %vm4207_vm1, %v4208_v12  ;;  %vm3206_vm12 = vcmask 33792   ;;  %p4187_p1 = scmp.lt.s32.totalorder %s3215_s6, %s3215_s6 }
   0xa   :  { %3790 = vmatprep.subr.bf16.mxu0 %v4206_v8  ;;  %3784 = vmatprep.subr.bf16.mxu1 %v3783_v33 }
   0xb   :  { %3786 = vmatpush3.bf16.msra.mxu1 %v3783_v33 }
   0xc   :  { %3793 = vmatprep.subr.bf16.mxu1 %v4206_v8 }
   0xd   :  { %3792 = vmatpush3.bf16.msra.mxu0 %v4324_v11 }
   0xe   :  { %3799 = vmatprep.subr.bf16.mxu0 %v4206_v8  ;;  %3453 = vmatmul.mubr.msk.f32.vlgmr.msra.gmra.mrb[0].mxu1 %vm73_vm0, %v66_v6 }
   0xf   :  { %3795 = vmatpush3.bf16.msra.mxu1 %v4313_v7  ;;  %3474 = vmatprep.mubr.msk.f32.mxu1 %vm4207_vm1, %v4208_v12 }
  0x10   :  { %3464 = vmatmul.mubr.f32.vlgmr.msra.gmra.mrb[2].mxu0 %v4208_v12  ;;  %3796 = vmatprep.subr.bf16.mxu1 %v4206_v8 }
  0x11   :  { %3801 = vmatpush3.bf16.msra.mxu0 %v4313_v7  ;;  %3485 = vmatprep.mubr.msk.f32.mxu0 %vm4207_vm1, %v4208_v12 }
  0x12   :  { %3802 = vmatprep.subr.bf16.mxu0 %v4206_v8 }
  0x13   :  { %3798 = vmatpush3.bf16.msra.mxu1 %v4324_v11 }
  0x14   :  { %3805 = vmatprep.subr.bf16.mxu1 %v4206_v8 }
  0x15   :  { %3804 = vmatpush3.bf16.msra.mxu0 %v4324_v11 }
  0x16   :  { %3811 = vmatprep.subr.bf16.mxu0 %v4206_v8 }
  0xdb   :  { %v3447_v14 = vpop.f32.mrb[0].mxu0 }
  0xdc   :  { %v4341_v15 = vadd.f32 %v3447_v14, %v3222_v13  ;;  %v146_v16 = vpop.f32.mrb[1].mxu0 }
  0xdd   :  { %v4343_v17 = vadd.f32 %v3222_v13, %v146_v16 }
  0xe1   :  { %v4369_v38 = vpop.f32.mrb[0].mxu1 }
  0xe2   :  { %v227_v39 = vpop.f32.mrb[1].mxu1 }
  0xe3   :  { %v306_v18 = vpop.f32.mrb[2].mxu0  ;;  %v4372_v40 = vadd.f32 %v4367_v37, %v227_v39 }
  0xe4   :  { %v310_v19 = vadd.f32 %v306_v18, %v4343_v17  ;;  %v3465_v20 = vpop.f32.mrb[3].mxu0 }
  0xe6   :  { %3982 = vtanh.f32 %v310_v19  ;;  %v3228_v22 = vmul.f32 -1.442695, %v310_v19 }
  0xe8   :  { %3984 = vpow2.f32 %v3228_v22 }
  0xf0   :  { %v3983_v21 = vpop.eup %3982 }
  0xf1   :  { %320 = vrot.lane.b32.xlu0 %v3983_v21, %s4209_s17 }
  0xf2   :  { %v3985_v23 = vpop.eup %3984 }
  0xf3   :  { %v314_v24 = vadd.f32 1.0, %v3985_v23 }
  0xf5   :  { %3986 = vrcp.f32 %v314_v24 }
  0xff   :  { %v3987_v25 = vpop.eup %3986 }
 0x100   :  { %v318_v28 = vmul.f32 0.0, %v3987_v25 }
 0x163   :  { %v321_v26 = vpop.permute.xlu0 %320 }
 0x164   :  { %v323_v27 = vmul.f32 %v3987_v25, %v321_v26 }
 0x166   :  { %325 = vrot.lane.b32.xlu0 %v323_v27, %s4210_s3 }
 0x1d8   :  { %v326_v29 = vpop.permute.xlu0 %325 }
 0x1d9   :  { %v328_v30 = vadd.f32 %v326_v29, %v318_v28 }
 0x1db   :  { %3988 = vtanh.f32 %v328_v30  ;;  %v425_v53 = vrot.slane %v328_v30, 6 }
 0x1e5   :  { %v3989_v34 = vpop.eup %3988 }
 0x1e6   :  { %331 = vrot.lane.b32.xlu1 %v3989_v34, %s4209_s17 }
 0x258   :  { %v332_v35 = vpop.permute.xlu1 %331 }
 0x259   :  { %v334_v36 = vmul.f32 %v3987_v25, %v332_v35 }
 0x25b   :  { %336 = vrot.lane.b32.xlu1 %v334_v36, %s4210_s3 }
 0x2cd   :  { %v337_v41 = vpop.permute.xlu1 %336 }
 0x2ce   :  { %3475 = vmatmul.mubr.msk.f32.vlgmr.msra.gmra.mrb[2].mxu1 %vm236_vm2, %v337_v41  ;;  %340 = vst.msk [vmem:[#allocation2] sm:$0x3] %vm339_vm3, %v337_v41 }
 0x2cf   :  { %3807 = vmatpush3.bf16.msra.mxu1 %v4313_v7  ;;  %3496 = vmatprep.mubr.msk.f32.mxu1 %vm4207_vm1, %v4208_v12 }
 0x2d0   :  { %3808 = vmatprep.subr.bf16.mxu1 %v4206_v8 }
 0x2d3   :  { %3810 = vmatpush3.bf16.msra.mxu1 %v4324_v11 }
 0x2d4   :  { %3817 = vmatprep.subr.bf16.mxu1 %v4206_v8 }
 0x3a1   :  { %v409_v42 = vpop.f32.mrb[2].mxu1 }
 0x3a2   :  { %v414_v43 = vrot.slane %v409_v42, 6  ;;  %v3476_v44 = vpop.f32.mrb[3].mxu1 }
 0x3a4   :  { %v416_v45 = vadd.f32 %v414_v43, %v4343_v17 }
 0x3a6   :  { %3990 = vtanh.f32 %v416_v45  ;;  %v3230_v47 = vmul.f32 -1.442695, %v416_v45 }
 0x3a8   :  { %3992 = vpow2.f32 %v3230_v47 }
 0x3b0   :  { %v3991_v46 = vpop.eup %3990 }
 0x3b1   :  { %429 = vrot.lane.b32.xlu0 %v3991_v46, %s4209_s17 }
 0x3b2   :  { %v3993_v48 = vpop.eup %3992 }
 0x3b3   :  { %v420_v49 = vadd.f32 1.0, %v3993_v48 }
 0x3b5   :  { %3994 = vrcp.f32 %v420_v49 }
 0x3bf   :  { %v3995_v50 = vpop.eup %3994 }
 0x3c0   :  { %v427_v54 = vmul.f32 %v3995_v50, %v425_v53 }
 0x423   :  { %v430_v51 = vpop.permute.xlu0 %429 }
 0x424   :  { %v432_v52 = vmul.f32 %v3995_v50, %v430_v51 }
 0x426   :  { %434 = vrot.lane.b32.xlu1 %v432_v52, %s4210_s3 }
 0x498   :  { %v435_v55 = vpop.permute.xlu1 %434 }
 0x499   :  { %v437_v56 = vadd.f32 %v435_v55, %v427_v54 }
 0x49b   :  { %3996 = vtanh.f32 %v437_v56  ;;  %v537_v13 = vrot.slane %v437_v56, 6 }
 0x4a5   :  { %v3997_v57 = vpop.eup %3996 }
 0x4a6   :  { %440 = vrot.lane.b32.xlu0 %v3997_v57, %s4209_s17 }
 0x518   :  { %v441_v58 = vpop.permute.xlu0 %440 }
 0x519   :  { %v4386_v59 = vmul.f32 %v3995_v50, %v441_v58 }
 0x51b   :  { %v450_v60 = vrot.slane %v4386_v59, 2 }
 0x51d   :  { %451 = vrot.lane.b32.xlu1 %v450_v60, %s4210_s3 }
 0x58f   :  { %v452_v61 = vpop.permute.xlu1 %451 }
 0x590   :  { %3486 = vmatmul.mubr.msk.f32.vlgmr.msra.gmra.mrb[4].mxu0 %vm236_vm2, %v452_v61 }
 0x591   :  { %3813 = vmatpush3.bf16.msra.mxu0 %v4313_v7  ;;  %3507 = vmatprep.mubr.msk.f32.mxu0 %vm4207_vm1, %v4208_v12 }
 0x592   :  { %3814 = vmatprep.subr.bf16.mxu0 %v4206_v8 }
 0x595   :  { %3816 = vmatpush3.bf16.msra.mxu0 %v4324_v11 }
 0x596   :  { %3823 = vmatprep.subr.bf16.mxu0 %v4206_v8 }
 0x663   :  { %v521_v62 = vpop.f32.mrb[4].mxu0 }
 0x664   :  { %v526_v63 = vrot.slane %v521_v62, 4  ;;  %v3487_v0 = vpop.f32.mrb[5].mxu0 }
 0x666   :  { %v528_v1 = vadd.f32 %v526_v63, %v4343_v17 }
 0x668   :  { %3998 = vtanh.f32 %v528_v1  ;;  %v3232_v3 = vmul.f32 -1.442695, %v528_v1 }
 0x66a   :  { %4000 = vpow2.f32 %v3232_v3 }
 0x672   :  { %v3999_v2 = vpop.eup %3998 }
 0x673   :  { %541 = vrot.lane.b32.xlu0 %v3999_v2, %s4209_s17 }
 0x674   :  { %v4001_v4 = vpop.eup %4000 }
 0x675   :  { %v532_v5 = vadd.f32 1.0, %v4001_v4 }
 0x677   :  { %4002 = vrcp.f32 %v532_v5 }
 0x681   :  { %v4003_v6 = vpop.eup %4002 }
 0x682   :  { %v539_v14 = vmul.f32 %v4003_v6, %v537_v13 }
 0x6e5   :  { %v542_v9 = vpop.permute.xlu0 %541 }
 0x6e6   :  { %v544_v10 = vmul.f32 %v4003_v6, %v542_v9 }
 0x6e8   :  { %546 = vrot.lane.b32.xlu1 %v544_v10, %s4210_s3 }
 0x75a   :  { %v547_v16 = vpop.permute.xlu1 %546 }
 0x75b   :  { %v549_v18 = vadd.f32 %v547_v16, %v539_v14 }
 0x75d   :  { %4004 = vtanh.f32 %v549_v18  ;;  %v649_v35 = vrot.slane %v549_v18, 6 }
 0x767   :  { %v4005_v19 = vpop.eup %4004 }
 0x768   :  { %552 = vrot.lane.b32.xlu0 %v4005_v19, %s4209_s17 }
 0x7da   :  { %v553_v20 = vpop.permute.xlu0 %552 }
 0x7db   :  { %v4401_v21 = vmul.f32 %v4003_v6, %v553_v20 }
 0x7dd   :  { %v562_v22 = vrot.slane %v4401_v21, 4 }
 0x7df   :  { %563 = vrot.lane.b32.xlu1 %v562_v22, %s4210_s3 }
 0x851   :  { %v564_v23 = vpop.permute.xlu1 %563 }
 0x852   :  { %3497 = vmatmul.mubr.msk.f32.vlgmr.msra.gmra.mrb[4].mxu1 %vm236_vm2, %v564_v23 }
 0x853   :  { %3819 = vmatpush3.bf16.msra.mxu1 %v4313_v7  ;;  %3518 = vmatprep.mubr.msk.f32.mxu1 %vm4207_vm1, %v4208_v12 }
 0x854   :  { %3820 = vmatprep.subr.bf16.mxu1 %v4206_v8 }
 0x857   :  { %3822 = vmatpush3.bf16.msra.mxu1 %v4324_v11 }
 0x858   :  { %3829 = vmatprep.subr.bf16.mxu1 %v4206_v8 }
 0x925   :  { %v633_v24 = vpop.f32.mrb[4].mxu1 }
 0x926   :  { %v638_v25 = vrot.slane %v633_v24, 2  ;;  %v3498_v26 = vpop.f32.mrb[5].mxu1 }
 0x927   :  { %v61_v26 = vld [vmem:[%s4873_s5 + $0x8] sm:$0xff] }
 0x928   :  { %v640_v27 = vadd.f32 %v638_v25, %v4343_v17  ;;  %v60_v25 = vld [vmem:[%s4873_s5] sm:$0xff] }
 0x92a   :  { %4006 = vtanh.f32 %v640_v27  ;;  %v3234_v29 = vmul.f32 -1.442695, %v640_v27  ;;  %v4454_v27 = vpack.c.bf16 %v61_v26, %v60_v25 }
 0x92c   :  { %4008 = vpow2.f32 %v3234_v29  ;;  %v63_v29 = vld [vmem:[%s4873_s5 + $0x18] sm:$0xff] }
 0x934   :  { %v4007_v28 = vpop.eup %4006 }
 0x935   :  { %653 = vrot.lane.b32.xlu0 %v4007_v28, %s4209_s17  ;;  %v62_v28 = vld [vmem:[%s4873_s5 + $0x10] sm:$0xff] }
 0x936   :  { %v4009_v30 = vpop.eup %4008 }
 0x937   :  { %v644_v31 = vadd.f32 1.0, %v4009_v30 }
 0x939   :  { %4010 = vrcp.f32 %v644_v31  ;;  %v4464_v31 = vpack.c.bf16 %v63_v29, %v62_v28 }
 0x943   :  { %v4011_v32 = vpop.eup %4010 }
 0x944   :  { %v651_v36 = vmul.f32 %v4011_v32, %v649_v35 }
 0x9a7   :  { %v654_v33 = vpop.permute.xlu0 %653 }
 0x9a8   :  { %v656_v34 = vmul.f32 %v4011_v32, %v654_v33 }
 0x9aa   :  { %658 = vrot.lane.b32.xlu1 %v656_v34, %s4210_s3 }
 0xa1c   :  { %v659_v39 = vpop.permute.xlu1 %658 }
 0xa1d   :  { %v661_v41 = vadd.f32 %v659_v39, %v651_v36  ;;  %v4481_v39 = vadd.f32 %v4369_v38, %v4367_v37 }
 0xa1f   :  { %4012 = vtanh.f32 %v661_v41  ;;  %v758_v56 = vrot.slane %v661_v41, 6 }
 0xa29   :  { %v4013_v17 = vpop.eup %4012 }
 0xa2a   :  { %664 = vrot.lane.b32.xlu0 %v4013_v17, %s4209_s17 }
 0xa9c   :  { %v665_v42 = vpop.permute.xlu0 %664 }
 0xa9d   :  { %v4416_v43 = vmul.f32 %v4011_v32, %v665_v42 }
 0xa9f   :  { %v674_v44 = vrot.slane %v4416_v43, 6 }
 0xaa1   :  { %675 = vrot.lane.b32.xlu1 %v674_v44, %s4210_s3 }
 0xb13   :  { %v676_v45 = vpop.permute.xlu1 %675 }
 0xb14   :  { %3508 = vmatmul.mubr.msk.f32.vlgmr.msra.gmra.mrb[6].mxu0 %vm236_vm2, %v676_v45 }
 0xb15   :  { %3825 = vmatpush3.bf16.msra.mxu0 %v4313_v7  ;;  %3529 = vmatprep.mubr.msk.f32.mxu0 %vm4207_vm1, %v4208_v12 }
 0xb16   :  { %3826 = vmatprep.subr.bf16.mxu0 %v4206_v8 }
 0xb19   :  { %3828 = vmatpush3.bf16.msra.mxu0 %v4324_v11 }
 0xb1a   :  { %3835 = vmatprep.subr.bf16.mxu0 %v4206_v8 }
 0xbe7   :  { %v745_v46 = vpop.f32.mrb[6].mxu0 }
 0xbe8   :  { %v749_v47 = vadd.f32 %v745_v46, %v4341_v15  ;;  %v3509_v48 = vpop.f32.mrb[7].mxu0 }
 0xbea   :  { %4014 = vtanh.f32 %v749_v47  ;;  %v3236_v50 = vmul.f32 -1.442695, %v749_v47 }
 0xbec   :  { %4016 = vpow2.f32 %v3236_v50 }
 0xbf4   :  { %v4015_v49 = vpop.eup %4014 }
 0xbf5   :  { %762 = vrot.lane.b32.xlu0 %v4015_v49, %s4209_s17 }
 0xbf6   :  { %v4017_v51 = vpop.eup %4016 }
 0xbf7   :  { %v753_v52 = vadd.f32 1.0, %v4017_v51 }
 0xbf9   :  { %4018 = vrcp.f32 %v753_v52 }
 0xc03   :  { %v4019_v53 = vpop.eup %4018 }
 0xc04   :  { %v760_v57 = vmul.f32 %v4019_v53, %v758_v56 }
 0xc67   :  { %v763_v54 = vpop.permute.xlu0 %762 }
 0xc68   :  { %v765_v55 = vmul.f32 %v4019_v53, %v763_v54 }
 0xc6a   :  { %767 = vrot.lane.b32.xlu1 %v765_v55, %s4210_s3 }
 0xcdc   :  { %v768_v58 = vpop.permute.xlu1 %767 }
 0xcdd   :  { %v770_v60 = vadd.f32 %v768_v58, %v760_v57 }
 0xcdf   :  { %4020 = vtanh.f32 %v770_v60 }
 0xce9   :  { %v4021_v61 = vpop.eup %4020 }
 0xcea   :  { %773 = vrot.lane.b32.xlu0 %v4021_v61, %s4209_s17 }
 0xd5c   :  { %v774_v62 = vpop.permute.xlu0 %773 }
 0xd5d   :  { %v776_v63 = vmul.f32 %v4019_v53, %v774_v62 }
 0xd5f   :  { %778 = vrot.lane.b32.xlu1 %v776_v63, %s4210_s3 }
 0xdd1   :  { %v779_v0 = vpop.permute.xlu1 %778 }
 0xdd2   :  { %781 = vst.msk [vmem:[#allocation2 + $0x8] sm:$0x3] %vm339_vm3, %v779_v0  ;;  %3519 = vmatmul.mubr.msk.f32.vlgmr.msra.gmra.mrb[6].mxu1 %vm236_vm2, %v779_v0 }
 0xdd3   :  { %3831 = vmatpush3.bf16.msra.mxu1 %v4313_v7  ;;  %3540 = vmatprep.mubr.msk.f32.mxu1 %vm4207_vm1, %v4208_v12 }
 0xdd4   :  { %3832 = vmatprep.subr.bf16.mxu1 %v4206_v8 }
 0xdd7   :  { %3834 = vmatpush3.bf16.msra.mxu1 %v4324_v11  ;;  %v866_v11 = vrot.slane %v770_v60, 6 }
 0xdd8   :  { %3841 = vmatprep.subr.bf16.mxu1 %v4206_v8 }
 0xea5   :  { %v850_v1 = vpop.f32.mrb[6].mxu1 }
 0xea6   :  { %v855_v2 = vrot.slane %v850_v1, 6  ;;  %v3520_v3 = vpop.f32.mrb[7].mxu1 }
 0xea8   :  { %v857_v4 = vadd.f32 %v855_v2, %v4341_v15 }
 0xeaa   :  { %4022 = vtanh.f32 %v857_v4  ;;  %v3238_v6 = vmul.f32 -1.442695, %v857_v4 }
 0xeac   :  { %4024 = vpow2.f32 %v3238_v6 }
 0xeb4   :  { %v4023_v5 = vpop.eup %4022 }
 0xeb5   :  { %870 = vrot.lane.b32.xlu0 %v4023_v5, %s4209_s17 }
 0xeb6   :  { %v4025_v7 = vpop.eup %4024 }
 0xeb7   :  { %v861_v9 = vadd.f32 1.0, %v4025_v7 }
 0xeb9   :  { %4026 = vrcp.f32 %v861_v9 }
 0xec3   :  { %v4027_v10 = vpop.eup %4026 }
 0xec4   :  { %v868_v16 = vmul.f32 %v4027_v10, %v866_v11 }
 0xf27   :  { %v871_v13 = vpop.permute.xlu0 %870 }
 0xf28   :  { %v873_v14 = vmul.f32 %v4027_v10, %v871_v13 }
 0xf2a   :  { %875 = vrot.lane.b32.xlu1 %v873_v14, %s4210_s3 }
 0xf9c   :  { %v876_v18 = vpop.permute.xlu1 %875 }
 0xf9d   :  { %v878_v19 = vadd.f32 %v876_v18, %v868_v16 }
 0xf9f   :  { %4028 = vtanh.f32 %v878_v19  ;;  %v977_v56 = vrot.slane %v878_v19, 6 }
 0xfa9   :  { %v4029_v20 = vpop.eup %4028 }
 0xfaa   :  { %881 = vrot.lane.b32.xlu0 %v4029_v20, %s4209_s17 }
0x101c   :  { %v882_v22 = vpop.permute.xlu0 %881 }
0x101d   :  { %v4444_v23 = vmul.f32 %v4027_v10, %v882_v22 }
0x101f   :  { %v890_v24 = vrot.slane %v4444_v23, 2 }
0x1021   :  { %891 = vrot.lane.b32.xlu1 %v890_v24, %s4210_s3 }
0x1093   :  { %v892_v30 = vpop.permute.xlu1 %891 }
0x1094   :  { %3530 = vmatmul.mubr.msk.f32.vlgmr.msra.gmra.mrb[8].mxu0 %vm236_vm2, %v892_v30 }
0x1095   :  { %3837 = vmatpush3.bf16.msra.mxu0 %v4454_v27  ;;  %3551 = vmatprep.mubr.msk.f32.mxu0 %vm4207_vm1, %v4208_v12 }
0x1096   :  { %3838 = vmatprep.subr.bf16.mxu0 %v4206_v8 }
0x1099   :  { %3840 = vmatpush3.bf16.msra.mxu0 %v4464_v31 }
0x109a   :  { %3847 = vmatprep.subr.bf16.mxu0 %v4206_v8 }
0x109c   :  { %3552 = vmatmul.mubr.f32.vlgmr.msra.gmra.mrb[10].mxu0 %v4208_v12 }
0x109d   :  { %3849 = vmatpush3.bf16.msra.mxu0 %v4454_v27  ;;  %3573 = vmatprep.mubr.msk.f32.mxu0 %vm4207_vm1, %v4208_v12 }
0x109e   :  { %3850 = vmatprep.subr.bf16.mxu0 %v4206_v8 }
0x10a1   :  { %3852 = vmatpush3.bf16.msra.mxu0 %v4464_v31 }
0x10a2   :  { %3859 = vmatprep.subr.bf16.mxu0 %v4206_v8 }
0x1167   :  { %v961_v32 = vpop.f32.mrb[8].mxu0 }
0x1168   :  { %v966_v33 = vrot.slane %v961_v32, 4  ;;  %v3531_v34 = vpop.f32.mrb[9].mxu0 }
0x116a   :  { %v968_v35 = vadd.f32 %v966_v33, %v4341_v15 }
0x116c   :  { %4030 = vtanh.f32 %v968_v35  ;;  %v3240_v46 = vmul.f32 -1.442695, %v968_v35 }
0x116f   :  { %v1178_v36 = vpop.f32.mrb[10].mxu0 }
0x1170   :  { %v1183_v41 = vrot.slane %v1178_v36, 2  ;;  %v3553_v17 = vpop.f32.mrb[11].mxu0 }
0x1172   :  { %v1185_v42 = vadd.f32 %v1183_v41, %v4481_v39 }
0x1174   :  { %4032 = vtanh.f32 %v1185_v42  ;;  %v3243_v47 = vmul.f32 -1.442695, %v1185_v42 }
0x1175   :  { %4034 = vpow2.f32 %v3240_v46 }
0x1176   :  { %v4031_v44 = vpop.eup %4030  ;;  %4036 = vpow2.f32 %v3243_v47 }
0x1177   :  { %981 = vrot.lane.b32.xlu0 %v4031_v44, %s4209_s17 }
0x117e   :  { %v4033_v45 = vpop.eup %4032 }
0x117f   :  { %1195 = vrot.lane.b32.xlu1 %v4033_v45, %s4209_s17  ;;  %v4035_v48 = vpop.eup %4034 }
0x1180   :  { %v972_v49 = vadd.f32 1.0, %v4035_v48  ;;  %v4037_v37 = vpop.eup %4036 }
0x1181   :  { %v1189_v38 = vadd.f32 1.0, %v4037_v37 }
0x1182   :  { %4038 = vrcp.f32 %v972_v49 }
0x1183   :  { %4040 = vrcp.f32 %v1189_v38 }
0x118c   :  { %v4039_v50 = vpop.eup %4038 }
0x118d   :  { %v4041_v53 = vpop.eup %4040  ;;  %v979_v57 = vmul.f32 %v4039_v50, %v977_v56 }
0x118e   :  { %v1193_v61 = vmul.f32 0.0, %v4041_v53 }
0x11e9   :  { %v982_v51 = vpop.permute.xlu0 %981 }
0x11ea   :  { %v984_v52 = vmul.f32 %v4039_v50, %v982_v51 }
0x11ec   :  { %986 = vrot.lane.b32.xlu0 %v984_v52, %s4210_s3 }
0x11f1   :  { %v1196_v54 = vpop.permute.xlu1 %1195 }
0x11f2   :  { %v1198_v55 = vmul.f32 %v4041_v53, %v1196_v54 }
0x11f4   :  { %1200 = vrot.lane.b32.xlu1 %v1198_v55, %s4210_s3 }
0x125e   :  { %v987_v58 = vpop.permute.xlu0 %986 }
0x125f   :  { %v4488_v60 = vadd.f32 %v987_v58, %v979_v57 }
0x1261   :  { %4042 = vtanh.f32 %v4488_v60 }
0x1266   :  { %v1201_v62 = vpop.permute.xlu1 %1200 }
0x1267   :  { %v1203_v63 = vadd.f32 %v1201_v62, %v1193_v61 }
0x1269   :  { %4044 = vtanh.f32 %v1203_v63  ;;  %v1303_v30 = vrot.slane %v1203_v63, 2 }
0x126b   :  { %v4043_v0 = vpop.eup %4042 }
0x126c   :  { %992 = vrot.lane.b32.xlu0 %v4043_v0, %s4209_s17 }
0x1273   :  { %v4045_v1 = vpop.eup %4044 }
0x1274   :  { %1206 = vrot.lane.b32.xlu1 %v4045_v1, %s4209_s17 }
0x12de   :  { %v993_v2 = vpop.permute.xlu0 %992 }
0x12df   :  { %v4493_v3 = vmul.f32 %v4039_v50, %v993_v2 }
0x12e1   :  { %v1001_v4 = vrot.slane %v4493_v3, 4 }
0x12e3   :  { %1002 = vrot.lane.b32.xlu0 %v1001_v4, %s4210_s3 }
0x12e6   :  { %v1207_v5 = vpop.permute.xlu1 %1206 }
0x12e7   :  { %v4497_v6 = vmul.f32 %v4041_v53, %v1207_v5 }
0x12e9   :  { %v1216_v7 = vrot.slane %v4497_v6, 6 }
0x12eb   :  { %1217 = vrot.lane.b32.xlu1 %v1216_v7, %s4210_s3 }
0x1355   :  { %v1003_v9 = vpop.permute.xlu0 %1002 }
0x1356   :  { %3541 = vmatmul.mubr.msk.f32.vlgmr.msra.gmra.mrb[8].mxu1 %vm236_vm2, %v1003_v9 }
0x1357   :  { %3843 = vmatpush3.bf16.msra.mxu1 %v4454_v27  ;;  %3562 = vmatprep.mubr.msk.f32.mxu1 %vm4207_vm1, %v4208_v12 }
0x1358   :  { %3844 = vmatprep.subr.bf16.mxu1 %v4206_v8 }
0x135b   :  { %3846 = vmatpush3.bf16.msra.mxu1 %v4464_v31 }
0x135c   :  { %3853 = vmatprep.subr.bf16.mxu1 %v4206_v8 }
0x135d   :  { %v1218_v10 = vpop.permute.xlu1 %1217 }
0x135e   :  { %3563 = vmatmul.mubr.msk.f32.vlgmr.msra.gmra.mrb[10].mxu1 %vm236_vm2, %v1218_v10 }
0x135f   :  { %3855 = vmatpush3.bf16.msra.mxu1 %v4454_v27  ;;  %3584 = vmatprep.mubr.msk.f32.mxu1 %vm4207_vm1, %v4208_v12 }
0x1360   :  { %3856 = vmatprep.subr.bf16.mxu1 %v4206_v8 }
0x1363   :  { %3858 = vmatpush3.bf16.msra.mxu1 %v4464_v31 }
0x1364   :  { %3865 = vmatprep.subr.bf16.mxu1 %v4206_v8 }
0x1429   :  { %v4515_v13 = vpop.f32.mrb[8].mxu1 }
0x142a   :  { %v3542_v14 = vpop.f32.mrb[9].mxu1 }
0x1431   :  { %v1287_v11 = vpop.f32.mrb[10].mxu1 }
0x1432   :  { %v1292_v16 = vrot.slane %v1287_v11, 4  ;;  %v3564_v18 = vpop.f32.mrb[11].mxu1 }
0x1434   :  { %v1294_v19 = vadd.f32 %v1292_v16, %v4481_v39 }
0x1436   :  { %4046 = vtanh.f32 %v1294_v19  ;;  %v3245_v22 = vmul.f32 -1.442695, %v1294_v19 }
0x1438   :  { %4048 = vpow2.f32 %v3245_v22 }
0x1440   :  { %v4047_v20 = vpop.eup %4046 }
0x1441   :  { %1307 = vrot.lane.b32.xlu0 %v4047_v20, %s4209_s17 }
0x1442   :  { %v4049_v24 = vpop.eup %4048 }
0x1443   :  { %v1298_v25 = vadd.f32 1.0, %v4049_v24 }
0x1445   :  { %4050 = vrcp.f32 %v1298_v25 }
0x144f   :  { %v4051_v26 = vpop.eup %4050 }
0x1450   :  { %v1305_v32 = vmul.f32 %v4051_v26, %v1303_v30 }
0x14b3   :  { %v1308_v28 = vpop.permute.xlu0 %1307 }
0x14b4   :  { %v1310_v29 = vmul.f32 %v4051_v26, %v1308_v28 }
0x14b6   :  { %1312 = vrot.lane.b32.xlu1 %v1310_v29, %s4210_s3 }
0x1528   :  { %v1313_v33 = vpop.permute.xlu1 %1312 }
0x1529   :  { %v1315_v34 = vadd.f32 %v1313_v33, %v1305_v32 }
0x152b   :  { %4052 = vtanh.f32 %v1315_v34  ;;  %v1415_v53 = vrot.slane %v1315_v34, 2 }
0x1535   :  { %v4053_v35 = vpop.eup %4052 }
0x1536   :  { %1318 = vrot.lane.b32.xlu0 %v4053_v35, %s4209_s17 }
0x15a8   :  { %v1319_v36 = vpop.permute.xlu0 %1318 }
0x15a9   :  { %v4521_v41 = vmul.f32 %v4051_v26, %v1319_v36 }
0x15ab   :  { %v1328_v17 = vrot.slane %v4521_v41, 4 }
0x15ad   :  { %1329 = vrot.lane.b32.xlu1 %v1328_v17, %s4210_s3 }
0x161f   :  { %v1330_v42 = vpop.permute.xlu1 %1329 }
0x1620   :  { %3574 = vmatmul.mubr.msk.f32.vlgmr.msra.gmra.mrb[12].mxu0 %vm236_vm2, %v1330_v42 }
0x1621   :  { %3861 = vmatpush3.bf16.msra.mxu0 %v4454_v27  ;;  %3595 = vmatprep.mubr.msk.f32.mxu0 %vm4207_vm1, %v4208_v12 }
0x1622   :  { %3862 = vmatprep.subr.bf16.mxu0 %v4206_v8 }
0x1625   :  { %3864 = vmatpush3.bf16.msra.mxu0 %v4464_v31 }
0x1626   :  { %3871 = vmatprep.subr.bf16.mxu0 %v4206_v8 }
0x16f3   :  { %v1399_v44 = vpop.f32.mrb[12].mxu0 }
0x16f4   :  { %v1404_v45 = vrot.slane %v1399_v44, 6  ;;  %v3575_v46 = vpop.f32.mrb[13].mxu0 }
0x16f6   :  { %v1406_v47 = vadd.f32 %v1404_v45, %v4481_v39 }
0x16f8   :  { %4054 = vtanh.f32 %v1406_v47  ;;  %v3247_v49 = vmul.f32 -1.442695, %v1406_v47 }
0x16fa   :  { %4056 = vpow2.f32 %v3247_v49 }
0x1702   :  { %v4055_v48 = vpop.eup %4054 }
0x1703   :  { %1419 = vrot.lane.b32.xlu0 %v4055_v48, %s4209_s17 }
0x1704   :  { %v4057_v37 = vpop.eup %4056 }
0x1705   :  { %v1410_v38 = vadd.f32 1.0, %v4057_v37 }
0x1707   :  { %4058 = vrcp.f32 %v1410_v38 }
0x1711   :  { %v4059_v50 = vpop.eup %4058 }
0x1712   :  { %v1417_v54 = vmul.f32 %v4059_v50, %v1415_v53 }
0x1775   :  { %v1420_v51 = vpop.permute.xlu0 %1419 }
0x1776   :  { %v1422_v52 = vmul.f32 %v4059_v50, %v1420_v51 }
0x1778   :  { %1424 = vrot.lane.b32.xlu1 %v1422_v52, %s4210_s3 }
0x17ea   :  { %v1425_v55 = vpop.permute.xlu1 %1424 }
0x17eb   :  { %v1427_v56 = vadd.f32 %v1425_v55, %v1417_v54 }
0x17ed   :  { %4060 = vtanh.f32 %v1427_v56  ;;  %v1524_v16 = vrot.slane %v1427_v56, 2 }
0x17f7   :  { %v4061_v57 = vpop.eup %4060 }
0x17f8   :  { %1430 = vrot.lane.b32.xlu0 %v4061_v57, %s4209_s17 }
0x186a   :  { %v1431_v58 = vpop.permute.xlu0 %1430 }
0x186b   :  { %v4536_v61 = vmul.f32 %v4059_v50, %v1431_v58 }
0x186d   :  { %v1440_v62 = vrot.slane %v4536_v61, 2 }
0x186f   :  { %1441 = vrot.lane.b32.xlu1 %v1440_v62, %s4210_s3 }
0x18e1   :  { %v1442_v63 = vpop.permute.xlu1 %1441 }
0x18e2   :  { %3585 = vmatmul.mubr.msk.f32.vlgmr.msra.gmra.mrb[12].mxu1 %vm236_vm2, %v1442_v63 }
0x18e3   :  { %3867 = vmatpush3.bf16.msra.mxu1 %v4454_v27  ;;  %3606 = vmatprep.mubr.msk.f32.mxu1 %vm4207_vm1, %v4208_v12 }
0x18e4   :  { %3868 = vmatprep.subr.bf16.mxu1 %v4206_v8 }
0x18e7   :  { %3870 = vmatpush3.bf16.msra.mxu1 %v4464_v31 }
0x18e8   :  { %3877 = vmatprep.subr.bf16.mxu1 %v4206_v8 }
0x19b5   :  { %v1511_v0 = vpop.f32.mrb[12].mxu1 }
0x19b6   :  { %v1515_v1 = vadd.f32 %v1511_v0, %v4481_v39  ;;  %v3586_v2 = vpop.f32.mrb[13].mxu1 }
0x19b8   :  { %4062 = vtanh.f32 %v1515_v1  ;;  %v3249_v5 = vmul.f32 -1.442695, %v1515_v1 }
0x19ba   :  { %4064 = vpow2.f32 %v3249_v5 }
0x19c2   :  { %v4063_v4 = vpop.eup %4062 }
0x19c3   :  { %1528 = vrot.lane.b32.xlu0 %v4063_v4, %s4209_s17 }
0x19c4   :  { %v4065_v7 = vpop.eup %4064 }
0x19c5   :  { %v1519_v9 = vadd.f32 1.0, %v4065_v7 }
0x19c7   :  { %4066 = vrcp.f32 %v1519_v9 }
0x19d1   :  { %v4067_v10 = vpop.eup %4066 }
0x19d2   :  { %v1526_v18 = vmul.f32 %v4067_v10, %v1524_v16 }
0x1a35   :  { %v1529_v14 = vpop.permute.xlu0 %1528 }
0x1a36   :  { %v1531_v11 = vmul.f32 %v4067_v10, %v1529_v14 }
0x1a38   :  { %1533 = vrot.lane.b32.xlu1 %v1531_v11, %s4210_s3 }
0x1aaa   :  { %v1534_v19 = vpop.permute.xlu1 %1533 }
0x1aab   :  { %v1536_v20 = vadd.f32 %v1534_v19, %v1526_v18 }
0x1aad   :  { %4068 = vtanh.f32 %v1536_v20  ;;  %v1635_v44 = vrot.slane %v1536_v20, 2 }
0x1ab7   :  { %v4069_v39 = vpop.eup %4068 }
0x1ab8   :  { %1539 = vrot.lane.b32.xlu0 %v4069_v39, %s4209_s17 }
0x1b2a   :  { %v1540_v22 = vpop.permute.xlu0 %1539 }
0x1b2b   :  { %v4551_v24 = vmul.f32 %v4067_v10, %v1540_v22 }
0x1b2d   :  { %1549 = vrot.lane.b32.xlu1 %v4551_v24, %s4210_s3 }
0x1b9f   :  { %v1550_v25 = vpop.permute.xlu1 %1549 }
0x1ba0   :  { %3596 = vmatmul.mubr.msk.f32.vlgmr.msra.gmra.mrb[14].mxu0 %vm236_vm2, %v1550_v25 }
0x1ba1   :  { %3873 = vmatpush3.bf16.msra.mxu0 %v4454_v27  ;;  %3617 = vmatprep.mubr.msk.f32.mxu0 %vm4207_vm1, %v4208_v12 }
0x1ba2   :  { %3874 = vmatprep.subr.bf16.mxu0 %v4206_v8 }
0x1ba5   :  { %3876 = vmatpush3.bf16.msra.mxu0 %v4464_v31 }
0x1c73   :  { %v1619_v26 = vpop.f32.mrb[14].mxu0 }
0x1c74   :  { %v1624_v28 = vrot.slane %v1619_v26, 2  ;;  %v3597_v29 = vpop.f32.mrb[15].mxu0 }
0x1c76   :  { %v1626_v30 = vadd.f32 %v1624_v28, %v4372_v40 }
0x1c78   :  { %4070 = vtanh.f32 %v1626_v30  ;;  %v3251_v33 = vmul.f32 -1.442695, %v1626_v30  ;;  %v1077_v30 = vrot.slane %v4515_v13, 2 }
0x1c7a   :  { %4072 = vpow2.f32 %v3251_v33 }
0x1c82   :  { %v4071_v32 = vpop.eup %4070 }
0x1c83   :  { %1639 = vrot.lane.b32.xlu0 %v4071_v32, %s4209_s17 }
0x1c84   :  { %v4073_v34 = vpop.eup %4072 }
0x1c85   :  { %v1630_v35 = vadd.f32 1.0, %v4073_v34 }
0x1c87   :  { %4074 = vrcp.f32 %v1630_v35  ;;  %v1079_v35 = vadd.f32 %v1077_v30, %v4341_v15 }
0x1c91   :  { %v4075_v36 = vpop.eup %4074 }
0x1c92   :  { %v1637_v45 = vmul.f32 %v4075_v36, %v1635_v44 }
0x1cf5   :  { %v1640_v17 = vpop.permute.xlu0 %1639 }
0x1cf6   :  { %v1642_v42 = vmul.f32 %v4075_v36, %v1640_v17 }
0x1cf8   :  { %1644 = vrot.lane.b32.xlu1 %v1642_v42, %s4210_s3  ;;  %v3242_v42 = vmul.f32 -1.442695, %v1079_v35 }
0x1d6a   :  { %v1645_v46 = vpop.permute.xlu1 %1644 }
0x1d6b   :  { %v1647_v47 = vadd.f32 %v1645_v46, %v1637_v45 }
0x1d6d   :  { %4076 = vtanh.f32 %v1647_v47 }
0x1d77   :  { %v4077_v48 = vpop.eup %4076 }
0x1d78   :  { %1650 = vrot.lane.b32.xlu0 %v4077_v48, %s4209_s17 }
0x1dea   :  { %v1651_v49 = vpop.permute.xlu0 %1650 }
0x1deb   :  { %v4565_v37 = vmul.f32 %v4075_v36, %v1651_v49 }
0x1ded   :  { %v1659_v38 = vrot.slane %v4565_v37, 6 }
0x1def   :  { %1660 = vrot.lane.b32.xlu1 %v1659_v38, %s4210_s3  ;;  %v1088_v38 = vrot.slane %v4488_v60, 6 }
0x1e61   :  { %v1661_v50 = vpop.permute.xlu1 %1660 }
0x1e62   :  { %3607 = vmatmul.mubr.msk.f32.vlgmr.msra.gmra.mrb[14].mxu1 %vm236_vm2, %v1661_v50 }
0x1e63   :  { %3879 = vmatpush3.bf16.msra.mxu1 %v4454_v27  ;;  %3628 = vmatprep.mubr.msk.f32.mxu1 %vm4207_vm1, %v4208_v12 }
0x1e64   :  { %3880 = vmatprep.subr.bf16.mxu1 %v4206_v8 }
0x1e67   :  { %3882 = vmatpush3.bf16.msra.mxu1 %v4464_v31  ;;  %v1746_v31 = vrot.slane %v1647_v47, 2 }
0x1f35   :  { %v1730_v51 = vpop.f32.mrb[14].mxu1 }
0x1f36   :  { %v1735_v52 = vrot.slane %v1730_v51, 4  ;;  %v3608_v53 = vpop.f32.mrb[15].mxu1 }
0x1f38   :  { %v1737_v54 = vadd.f32 %v1735_v52, %v4372_v40 }
0x1f3a   :  { %4078 = vtanh.f32 %v1737_v54  ;;  %v3253_v56 = vmul.f32 -1.442695, %v1737_v54 }
0x1f3c   :  { %4080 = vpow2.f32 %v3253_v56 }
0x1f44   :  { %v4079_v55 = vpop.eup %4078 }
0x1f45   :  { %1750 = vrot.lane.b32.xlu0 %v4079_v55, %s4209_s17 }
0x1f46   :  { %v4081_v57 = vpop.eup %4080 }
0x1f47   :  { %v1741_v27 = vadd.f32 1.0, %v4081_v57 }
0x1f49   :  { %4082 = vrcp.f32 %v1741_v27 }
0x1f53   :  { %v4083_v58 = vpop.eup %4082 }
0x1f54   :  { %v1748_v0 = vmul.f32 %v4083_v58, %v1746_v31 }
0x1fb7   :  { %v1751_v62 = vpop.permute.xlu0 %1750 }
0x1fb8   :  { %v1753_v63 = vmul.f32 %v4083_v58, %v1751_v62 }
0x1fba   :  { %1755 = vrot.lane.b32.xlu1 %v1753_v63, %s4210_s3 }
0x202c   :  { %v1756_v1 = vpop.permute.xlu1 %1755 }
0x202d   :  { %v1758_v2 = vadd.f32 %v1756_v1, %v1748_v0 }
0x202f   :  { %4084 = vtanh.f32 %v1758_v2  ;;  %v1857_v29 = vrot.slane %v1758_v2, 2 }
0x2039   :  { %v4085_v4 = vpop.eup %4084 }
0x203a   :  { %1761 = vrot.lane.b32.xlu0 %v4085_v4, %s4209_s17 }
0x20ac   :  { %v1762_v5 = vpop.permute.xlu0 %1761 }
0x20ad   :  { %v4579_v7 = vmul.f32 %v4083_v58, %v1762_v5 }
0x20af   :  { %v1770_v9 = vrot.slane %v4579_v7, 4 }
0x20b1   :  { %1771 = vrot.lane.b32.xlu1 %v1770_v9, %s4210_s3  ;;  %v1989_v9 = vld [vmem:[%s4875_s7] sm:$0xff] }
0x2123   :  { %v1772_v10 = vpop.permute.xlu1 %1771 }
0x2124   :  { %3618 = vmatmul.mubr.msk.f32.vlgmr.msra.gmra.mrb[16].mxu0 %vm236_vm2, %v1772_v10  ;;  %v1990_v10 = vld [vmem:[%s4875_s7 + $0x8] sm:$0xff] }
0x21f7   :  { %v1841_v14 = vpop.f32.mrb[16].mxu0 }
0x21f8   :  { %v1846_v11 = vrot.slane %v1841_v14, 6  ;;  %v3619_v16 = vpop.f32.mrb[17].mxu0  ;;  %v2002_v14 = vld [vmem:[%s4878_s10] sm:$0xff] }
0x21f9   :  { %v1991_v16 = vld [vmem:[%s4875_s7 + $0x10] sm:$0xff] }
0x21fa   :  { %v1848_v18 = vadd.f32 %v1846_v11, %v4372_v40  ;;  %v3883_v11 = vpack.c.bf16 %v1990_v10, %v1989_v9 }
0x21fc   :  { %4086 = vtanh.f32 %v1848_v18  ;;  %v3255_v20 = vmul.f32 -1.442695, %v1848_v18  ;;  %v1992_v18 = vld [vmem:[%s4875_s7 + $0x18] sm:$0xff]  ;;  %3884 = vmatprep.subr.bf16.mxu0 %v3883_v11 }
0x21fd   :  { %3886 = vmatpush3.bf16.msra.mxu0 %v3883_v11 }
0x21fe   :  { %4088 = vpow2.f32 %v3255_v20  ;;  %v3887_v20 = vpack.c.bf16 %v1992_v18, %v1991_v16 }
0x2200   :  { %3888 = vmatprep.subr.bf16.mxu0 %v3887_v20 }
0x2201   :  { %3890 = vmatpush3.bf16.msra.mxu0 %v3887_v20 }
0x2206   :  { %v4087_v19 = vpop.eup %4086 }
0x2207   :  { %1861 = vrot.lane.b32.xlu0 %v4087_v19, %s4209_s17 }
0x2208   :  { %v4089_v39 = vpop.eup %4088 }
0x2209   :  { %v1852_v22 = vadd.f32 1.0, %v4089_v39 }
0x220b   :  { %4090 = vrcp.f32 %v1852_v22  ;;  %v2005_v22 = vld [vmem:[%s4878_s10 + $0x18] sm:$0xff] }
0x2215   :  { %v4091_v25 = vpop.eup %4090 }
0x2216   :  { %v1859_v32 = vmul.f32 %v4091_v25, %v1857_v29  ;;  %v2007_v29 = vld [vmem:[%s4878_s10 + $0x28] sm:$0xff] }
0x2279   :  { %v1862_v26 = vpop.permute.xlu0 %1861 }
0x227a   :  { %v1864_v28 = vmul.f32 %v4091_v25, %v1862_v26  ;;  %v1993_v26 = vld [vmem:[%s4875_s7 + $0x20] sm:$0xff] }
0x227c   :  { %1866 = vrot.lane.b32.xlu1 %v1864_v28, %s4210_s3  ;;  %v2006_v28 = vld [vmem:[%s4878_s10 + $0x20] sm:$0xff] }
0x227d   :  { %v3907_v30 = vpack.c.bf16 %v2007_v29, %v2006_v28 }
0x22ee   :  { %v1867_v33 = vpop.permute.xlu1 %1866 }
0x22ef   :  { %v4588_v34 = vadd.f32 %v1867_v33, %v1859_v32  ;;  %v1995_v32 = vld [vmem:[%s4875_s7 + $0x30] sm:$0xff]  ;;  %v1996_v33 = vld [vmem:[%s4875_s7 + $0x38] sm:$0xff] }
0x22f1   :  { %4092 = vtanh.f32 %v4588_v34  ;;  %v1965_v1 = vrot.slane %v4588_v34, 2  ;;  %v3895_v34 = vpack.c.bf16 %v1996_v33, %v1995_v32 }
0x22f2   :  { %4094 = vtanh.f32 %v1079_v35  ;;  %v2008_v35 = vld [vmem:[%s4878_s10 + $0x30] sm:$0xff] }
0x22f3   :  { %4096 = vpow2.f32 %v3242_v42 }
0x22fb   :  { %v4093_v36 = vpop.eup %4092 }
0x22fc   :  { %1872 = vrot.lane.b32.xlu0 %v4093_v36, %s4209_s17  ;;  %v4095_v17 = vpop.eup %4094  ;;  %v2009_v36 = vld [vmem:[%s4878_s10 + $0x38] sm:$0xff] }
0x22fd   :  { %v4097_v44 = vpop.eup %4096 }
0x22fe   :  { %v1083_v45 = vadd.f32 1.0, %v4097_v44 }
0x2300   :  { %1092 = vrot.lane.b32.xlu0 %v4095_v17, %s4209_s17  ;;  %4098 = vrcp.f32 %v1083_v45  ;;  %v3911_v17 = vpack.c.bf16 %v2009_v36, %v2008_v35 }
0x230a   :  { %v4594_v48 = vpop.eup %4098 }
0x230b   :  { %v1090_v51 = vmul.f32 %v4594_v48, %v1088_v38 }
0x236e   :  { %v1873_v13 = vpop.permute.xlu0 %1872 }
0x236f   :  { %v1875_v46 = vmul.f32 %v4091_v25, %v1873_v13 }
0x2371   :  { %v1881_v47 = vrot.slane %v1875_v46, 2 }
0x2372   :  { %v1093_v15 = vpop.permute.xlu0 %1092 }
0x2373   :  { %v1095_v49 = vmul.f32 %v4594_v48, %v1093_v15  ;;  %1882 = vrot.lane.b32.xlu1 %v1881_v47, %s4210_s3 }
0x2375   :  { %1097 = vrot.lane.b32.xlu0 %v1095_v49, %s4210_s3 }
0x23e5   :  { %v1883_v50 = vpop.permute.xlu1 %1882 }
0x23e6   :  { %3629 = vmatmul.mubr.msk.f32.vlgmr.msra.gmra.mrb[16].mxu1 %vm236_vm2, %v1883_v50  ;;  %v1997_v50 = vld [vmem:[%s4876_s8] sm:$0xff] }
0x23e7   :  { %v1098_v52 = vpop.permute.xlu0 %1097 }
0x23e8   :  { %v1100_v53 = vadd.f32 %v1098_v52, %v1090_v51  ;;  %v1998_v51 = vld [vmem:[%s4876_s8 + $0x8] sm:$0xff] }
0x23ea   :  { %4100 = vtanh.f32 %v1100_v53  ;;  %v4700_v53 = vpack.c.bf16 %v1998_v51, %v1997_v50 }
0x23f4   :  { %v4101_v54 = vpop.eup %4100 }
0x23f5   :  { %1103 = vrot.lane.b32.xlu0 %v4101_v54, %s4209_s17  ;;  %v1999_v54 = vld [vmem:[%s4876_s8 + $0x10] sm:$0xff] }
0x23f9   :  { %445 = vrot.lane.b32.xlu0 %v4386_v59, %s4210_s3 }
0x23fd   :  { %669 = vrot.lane.b32.xlu0 %v4416_v43, %s4210_s3 }
0x2401   :  { %997 = vrot.lane.b32.xlu0 %v4493_v3, %s4210_s3 }
0x2405   :  { %1655 = vrot.lane.b32.xlu0 %v4565_v37, %s4209_s17 }
0x2409   :  { %1877 = vrot.lane.b32.xlu0 %v1875_v46, %s4209_s17 }
0x240d   :  { %1211 = vrot.lane.b32.xlu0 %v4497_v6, %s4209_s17 }
0x2411   :  { %1435 = vrot.lane.b32.xlu0 %v4536_v61, %s4209_s17 }
0x2467   :  { %v1104_v60 = vpop.permute.xlu0 %1103 }
0x2468   :  { %v1106_v39 = vmul.f32 %v4594_v48, %v1104_v60  ;;  %v2000_v60 = vld [vmem:[%s4876_s8 + $0x18] sm:$0xff] }
0x246b   :  { %v446_v59 = vpop.permute.xlu0 %445 }
0x246c   :  { %449 = vst.msk [vmem:[#allocation2] sm:$0xc] %vm448_vm4, %v446_v59 }
0x246f   :  { %v670_v43 = vpop.permute.xlu0 %669 }
0x2470   :  { %673 = vst.msk [vmem:[#allocation2] sm:$0xc0] %vm672_vm5, %v670_v43  ;;  %v4709_v43 = vpack.c.bf16 %v2000_v60, %v1999_v54 }
0x2473   :  { %v998_v3 = vpop.permute.xlu0 %997 }
0x2474   :  { %1000 = vst.msk [vmem:[#allocation2 + $0x8] sm:$0x30] %vm560_vm6, %v998_v3  ;;  %v3258_v3 = vld [vmem:[%s4877_s9] ss:$0 sm:$0xff] }
0x2477   :  { %v1656_v37 = vpop.permute.xlu0 %1655 }
0x2478   :  { %1658 = vst.msk [vmem:[#allocation2] sm:$0xc0] %vm1214_vm7, %v1656_v37 }
0x247b   :  { %v1878_v6 = vpop.permute.xlu0 %1877 }
0x247c   :  { %1880 = vst.msk [vmem:[#allocation2] sm:$0xc] %vm1438_vm8, %v1878_v6 }
0x247f   :  { %v1212_v45 = vpop.permute.xlu0 %1211 }
0x2483   :  { %v1436_v47 = vpop.permute.xlu0 %1435 }
0x24b9   :  { %v1952_v61 = vpop.f32.mrb[16].mxu1 }
0x24ba   :  { %v1956_v55 = vadd.f32 %v1952_v61, %v4372_v40  ;;  %v3630_v56 = vpop.f32.mrb[17].mxu1 }
0x24bc   :  { %4102 = vtanh.f32 %v1956_v55  ;;  %v3257_v27 = vmul.f32 -1.442695, %v1956_v55 }
0x24be   :  { %4104 = vpow2.f32 %v3257_v27 }
0x24c6   :  { %v4103_v57 = vpop.eup %4102 }
0x24c7   :  { %1969 = vrot.lane.b32.xlu1 %v4103_v57, %s4209_s17 }
0x24c8   :  { %v4105_v58 = vpop.eup %4104 }
0x24c9   :  { %v1960_v62 = vadd.f32 1.0, %v4105_v58 }
0x24cb   :  { %4106 = vrcp.f32 %v1960_v62 }
0x24d5   :  { %v4107_v63 = vpop.eup %4106 }
0x24d6   :  { %v1967_v2 = vmul.f32 %v4107_v63, %v1965_v1 }
0x2539   :  { %v1970_v31 = vpop.permute.xlu1 %1969 }
0x253a   :  { %v1972_v0 = vmul.f32 %v4107_v63, %v1970_v31 }
0x253c   :  { %1974 = vrot.lane.b32.xlu1 %v1972_v0, %s4210_s3 }
0x25ae   :  { %v1975_v4 = vpop.permute.xlu1 %1974 }
0x25af   :  { %v1977_v40 = vadd.f32 %v1975_v4, %v1967_v2 }
0x25b1   :  { %4108 = vtanh.f32 %v1977_v40 }
0x25bb   :  { %v4109_v5 = vpop.eup %4108 }
0x25bc   :  { %1980 = vrot.lane.b32.xlu1 %v4109_v5, %s4209_s17 }
0x25c0   :  { %557 = vrot.lane.b32.xlu1 %v4401_v21, %s4210_s3  ;;  %v2003_v21 = vld [vmem:[%s4878_s10 + $0x8] sm:$0xff] }
0x25c1   :  { %v3899_v19 = vpack.c.bf16 %v2003_v21, %v2002_v14 }
0x25c3   :  { %3900 = vmatprep.subr.bf16.mxu1 %v3899_v19 }
0x25c4   :  { %886 = vrot.lane.b32.xlu1 %v4444_v23, %s4210_s3  ;;  %3902 = vmatpush3.bf16.msra.mxu1 %v3899_v19  ;;  %v2004_v23 = vld [vmem:[%s4878_s10 + $0x10] sm:$0xff] }
0x25c5   :  { %v3903_v25 = vpack.c.bf16 %v2005_v22, %v2004_v23 }
0x25c7   :  { %3904 = vmatprep.subr.bf16.mxu1 %v3903_v25 }
0x25c8   :  { %1108 = vrot.lane.b32.xlu1 %v1106_v39, %s4210_s3  ;;  %3906 = vmatpush3.bf16.msra.mxu1 %v3903_v25 }
0x25c9   :  { %3908 = vmatprep.subr.bf16.mxu1 %v3907_v30 }
0x25cc   :  { %1766 = vrot.lane.b32.xlu1 %v4579_v7, %s4209_s17  ;;  %v1994_v7 = vld [vmem:[%s4875_s7 + $0x28] sm:$0xff]  ;;  %3910 = vmatpush3.bf16.msra.mxu1 %v3907_v30 }
0x25cd   :  { %3912 = vmatprep.subr.bf16.mxu1 %v3911_v17 }
0x25d0   :  { %1323 = vrot.lane.b32.xlu1 %v4521_v41, %s4209_s17  ;;  %v3891_v41 = vpack.c.bf16 %v1994_v7, %v1993_v26  ;;  %3914 = vmatpush3.bf16.msra.mxu1 %v3911_v17 }
0x25d1   :  { %3921 = vmatprep.subr.bf16.mxu1 %v4206_v8 }
0x25d2   :  { %3892 = vmatprep.subr.bf16.mxu0 %v3891_v41 }
0x25d3   :  { %3894 = vmatpush3.bf16.msra.mxu0 %v3891_v41 }
0x25d4   :  { %3896 = vmatprep.subr.bf16.mxu0 %v3895_v34 }
0x25d7   :  { %3898 = vmatpush3.bf16.msra.mxu0 %v3895_v34 }
0x25d8   :  { %3915 = vmatprep.subr.bf16.mxu0 %v4206_v8 }
0x262e   :  { %v1981_v42 = vpop.permute.xlu1 %1980 }
0x262f   :  { %v1983_v44 = vmul.f32 %v4107_v63, %v1981_v42 }
0x2631   :  { %1985 = vrot.lane.b32.xlu1 %v1983_v44, %s4209_s17 }
0x2632   :  { %v558_v13 = vpop.permute.xlu1 %557 }
0x2633   :  { %561 = vst.msk [vmem:[#allocation2] sm:$0x30] %vm560_vm6, %v558_v13 }
0x2635   :  { %1544 = vrot.lane.b32.xlu1 %v4551_v24, %s4209_s17 }
0x2636   :  { %v887_v46 = vpop.permute.xlu1 %886 }
0x2637   :  { %889 = vst.msk [vmem:[#allocation2 + $0x8] sm:$0xc] %vm448_vm4, %v887_v46 }
0x2638   :  { %1439 = vst.msk [vmem:[#allocation2 + $0x8] sm:$0xc] %vm1438_vm8, %v1436_v47 }
0x263a   :  { %v1109_v48 = vpop.permute.xlu1 %1108 }
0x263b   :  { %1111 = vst.msk [vmem:[#allocation2 + $0x8] sm:$0xc0] %vm672_vm5, %v1109_v48 }
0x263c   :  { %1215 = vst.msk [vmem:[#allocation2 + $0x8] sm:$0xc0] %vm1214_vm7, %v1212_v45 }
0x263e   :  { %v1767_v15 = vpop.permute.xlu1 %1766 }
0x263f   :  { %1769 = vst.msk [vmem:[#allocation2] sm:$0x30] %vm1326_vm9, %v1767_v15 }
0x2642   :  { %v1324_v49 = vpop.permute.xlu1 %1323 }
0x2643   :  { %1327 = vst.msk [vmem:[#allocation2 + $0x8] sm:$0x30] %vm1326_vm9, %v1324_v49 }
0x26a3   :  { %v1986_v38 = vpop.permute.xlu1 %1985 }
0x26a4   :  { %1988 = vst.msk [vmem:[#allocation2] sm:$0x3] %vm1547_vm10, %v1986_v38 }
0x26a7   :  { %v1545_v24 = vpop.permute.xlu1 %1544 }
0x26a8   :  { %1548 = vst.msk [vmem:[#allocation2 + $0x8] sm:$0x3] %vm1547_vm10, %v1545_v24 }
0x26ab   :  { %v2011_v52 = vld [vmem:[#allocation2] sm:$0xff] }
0x26ac   :  { %3647 = vmatprep.mubr.msk.f32.mxu0 %vm2019_vm11, %v2011_v52  ;;  %3666 = vmatprep.mubr.msk.f32.mxu1 %vm2019_vm11, %v2011_v52 }
0x26af   :  { %v2012_v59 = vld [vmem:[#allocation2 + $0x8] sm:$0xff] }
0x26b0   :  { %3648 = vmatmul.mubr.msk.f32.vlgmr.msra.gmra.mrb[18].mxu0 %vm2019_vm11, %v2012_v59  ;;  %3667 = vmatmul.mubr.msk.f32.vlgmr.msra.gmra.mrb[18].mxu1 %vm2019_vm11, %v2012_v59 }
0x26b1   :  { %3917 = vmatpush3.bf16.msra.mxu0 %v4700_v53  ;;  %3677 = vmatprep.mubr.msk.f32.mxu0 %vm4207_vm1, %v4208_v12 }
0x26b2   :  { %3918 = vmatprep.subr.bf16.mxu0 %v4206_v8  ;;  %3923 = vmatpush3.bf16.msra.mxu1 %v4700_v53 }
0x26b3   :  { %3924 = vmatprep.subr.bf16.mxu1 %v4206_v8  ;;  %3688 = vmatprep.mubr.msk.f32.mxu1 %vm4207_vm1, %v4208_v12 }
0x26b5   :  { %3920 = vmatpush3.bf16.msra.mxu0 %v4709_v43 }
0x26b6   :  { %3926 = vmatpush3.bf16.msra.mxu1 %v4709_v43  ;;  %3927 = vmatprep.subr.bf16.mxu0 %v4206_v8 }
0x26b7   :  { %3933 = vmatprep.subr.bf16.mxu1 %v4206_v8 }
0x26b8   :  { %3678 = vmatmul.mubr.f32.vlgmr.msra.gmra.mrb[20].mxu0 %v4208_v12 }
0x26b9   :  { %3929 = vmatpush3.bf16.msra.mxu0 %v4700_v53  ;;  %3699 = vmatprep.mubr.msk.f32.mxu0 %vm4207_vm1, %v4208_v12 }
0x26ba   :  { %3930 = vmatprep.subr.bf16.mxu0 %v4206_v8 }
0x26bd   :  { %3932 = vmatpush3.bf16.msra.mxu0 %v4709_v43 }
0x26be   :  { %3939 = vmatprep.subr.bf16.mxu0 %v4206_v8 }
0x2783   :  { %v3649_v37 = vpop.f32.mrb[18].mxu0  ;;  %v4732_v6 = vpop.f32.mrb[18].mxu1 }
0x2784   :  { %v4734_v61 = vadd.f32 %v3649_v37, %v3258_v3  ;;  %v2092_v55 = vpop.f32.mrb[19].mxu0  ;;  %v2173_v56 = vpop.f32.mrb[19].mxu1 }
0x2785   :  { %v4736_v57 = vadd.f32 %v3258_v3, %v2092_v55 }
0x278b   :  { %v2247_v27 = vpop.f32.mrb[20].mxu0 }
0x278c   :  { %v2251_v58 = vadd.f32 %v2247_v27, %v4736_v57  ;;  %v3679_v62 = vpop.f32.mrb[21].mxu0 }
0x278e   :  { %4110 = vtanh.f32 %v2251_v58  ;;  %v3264_v31 = vmul.f32 -1.442695, %v2251_v58 }
0x2790   :  { %4112 = vpow2.f32 %v3264_v31 }
0x2798   :  { %v4111_v63 = vpop.eup %4110 }
0x2799   :  { %2261 = vrot.lane.b32.xlu0 %v4111_v63, %s4209_s17 }
0x279a   :  { %v4113_v0 = vpop.eup %4112 }
0x279b   :  { %v2255_v1 = vadd.f32 1.0, %v4113_v0 }
0x279d   :  { %4114 = vrcp.f32 %v2255_v1 }
0x27a7   :  { %v4115_v2 = vpop.eup %4114 }
0x27a8   :  { %v2259_v5 = vmul.f32 0.0, %v4115_v2 }
0x280b   :  { %v2262_v4 = vpop.permute.xlu0 %2261 }
0x280c   :  { %v2264_v40 = vmul.f32 %v4115_v2, %v2262_v4 }
0x280e   :  { %2266 = vrot.lane.b32.xlu1 %v2264_v40, %s4210_s3 }
0x2880   :  { %v2267_v9 = vpop.permute.xlu1 %2266 }
0x2881   :  { %v2269_v10 = vadd.f32 %v2267_v9, %v2259_v5 }
0x2883   :  { %4116 = vtanh.f32 %v2269_v10  ;;  %v2363_v29 = vrot.slane %v2269_v10, 6 }
0x288d   :  { %v4117_v14 = vpop.eup %4116 }
0x288e   :  { %2272 = vrot.lane.b32.xlu0 %v4117_v14, %s4209_s17 }
0x2900   :  { %v2273_v11 = vpop.permute.xlu0 %2272 }
0x2901   :  { %v2275_v21 = vmul.f32 %v4115_v2, %v2273_v11 }
0x2903   :  { %2277 = vrot.lane.b32.xlu1 %v2275_v21, %s4210_s3 }
0x2975   :  { %v2278_v16 = vpop.permute.xlu1 %2277 }
0x2976   :  { %3689 = vmatmul.mubr.msk.f32.vlgmr.msra.gmra.mrb[20].mxu1 %vm236_vm2, %v2278_v16 }
0x2977   :  { %3935 = vmatpush3.bf16.msra.mxu1 %v4700_v53  ;;  %3710 = vmatprep.mubr.msk.f32.mxu1 %vm4207_vm1, %v4208_v12 }
0x2978   :  { %3936 = vmatprep.subr.bf16.mxu1 %v4206_v8 }
0x297b   :  { %3938 = vmatpush3.bf16.msra.mxu1 %v4709_v43 }
0x297c   :  { %3945 = vmatprep.subr.bf16.mxu1 %v4206_v8 }
0x2a49   :  { %v2347_v18 = vpop.f32.mrb[20].mxu1 }
0x2a4a   :  { %v2352_v19 = vrot.slane %v2347_v18, 6  ;;  %v3690_v20 = vpop.f32.mrb[21].mxu1 }
0x2a4c   :  { %v2354_v39 = vadd.f32 %v2352_v19, %v4736_v57 }
0x2a4e   :  { %4118 = vtanh.f32 %v2354_v39  ;;  %v3266_v22 = vmul.f32 -1.442695, %v2354_v39 }
0x2a50   :  { %4120 = vpow2.f32 %v3266_v22 }
0x2a58   :  { %v4119_v23 = vpop.eup %4118 }
0x2a59   :  { %2367 = vrot.lane.b32.xlu0 %v4119_v23, %s4209_s17 }
0x2a5a   :  { %v4121_v25 = vpop.eup %4120 }
0x2a5b   :  { %v2358_v26 = vadd.f32 1.0, %v4121_v25 }
0x2a5d   :  { %4122 = vrcp.f32 %v2358_v26 }
0x2a67   :  { %v4123_v7 = vpop.eup %4122 }
0x2a68   :  { %v2365_v30 = vmul.f32 %v4123_v7, %v2363_v29 }
0x2acb   :  { %v2368_v41 = vpop.permute.xlu0 %2367 }
0x2acc   :  { %v2370_v28 = vmul.f32 %v4123_v7, %v2368_v41 }
0x2ace   :  { %2372 = vrot.lane.b32.xlu1 %v2370_v28, %s4210_s3 }
0x2b40   :  { %v2373_v32 = vpop.permute.xlu1 %2372 }
0x2b41   :  { %v2375_v33 = vadd.f32 %v2373_v32, %v2365_v30 }
0x2b43   :  { %4124 = vtanh.f32 %v2375_v33  ;;  %v2470_v51 = vrot.slane %v2375_v33, 6 }
0x2b4d   :  { %v4125_v34 = vpop.eup %4124 }
0x2b4e   :  { %2378 = vrot.lane.b32.xlu0 %v4125_v34, %s4209_s17 }
0x2bc0   :  { %v2379_v35 = vpop.permute.xlu0 %2378 }
0x2bc1   :  { %v2381_v36 = vmul.f32 %v4123_v7, %v2379_v35 }
0x2bc3   :  { %v2383_v17 = vrot.slane %v2381_v36, 2 }
0x2bc5   :  { %2384 = vrot.lane.b32.xlu1 %v2383_v17, %s4210_s3 }
0x2c37   :  { %v2385_v42 = vpop.permute.xlu1 %2384 }
0x2c38   :  { %3700 = vmatmul.mubr.msk.f32.vlgmr.msra.gmra.mrb[22].mxu0 %vm236_vm2, %v2385_v42 }
0x2c39   :  { %3941 = vmatpush3.bf16.msra.mxu0 %v4700_v53  ;;  %3721 = vmatprep.mubr.msk.f32.mxu0 %vm4207_vm1, %v4208_v12 }
0x2c3a   :  { %3942 = vmatprep.subr.bf16.mxu0 %v4206_v8 }
0x2c3d   :  { %3944 = vmatpush3.bf16.msra.mxu0 %v4709_v43 }
0x2c3e   :  { %3951 = vmatprep.subr.bf16.mxu0 %v4206_v8 }
0x2d0b   :  { %v2454_v44 = vpop.f32.mrb[22].mxu0 }
0x2d0c   :  { %v2459_v45 = vrot.slane %v2454_v44, 4  ;;  %v3701_v13 = vpop.f32.mrb[23].mxu0 }
0x2d0e   :  { %v2461_v46 = vadd.f32 %v2459_v45, %v4736_v57 }
0x2d10   :  { %4126 = vtanh.f32 %v2461_v46  ;;  %v3268_v48 = vmul.f32 -1.442695, %v2461_v46 }
0x2d12   :  { %4128 = vpow2.f32 %v3268_v48 }
0x2d1a   :  { %v4127_v47 = vpop.eup %4126 }
0x2d1b   :  { %2474 = vrot.lane.b32.xlu0 %v4127_v47, %s4209_s17 }
0x2d1c   :  { %v4129_v15 = vpop.eup %4128 }
0x2d1d   :  { %v2465_v49 = vadd.f32 1.0, %v4129_v15 }
0x2d1f   :  { %4130 = vrcp.f32 %v2465_v49 }
0x2d29   :  { %v4131_v38 = vpop.eup %4130 }
0x2d2a   :  { %v2472_v52 = vmul.f32 %v4131_v38, %v2470_v51 }
0x2d8d   :  { %v2475_v24 = vpop.permute.xlu0 %2474 }
0x2d8e   :  { %v2477_v50 = vmul.f32 %v4131_v38, %v2475_v24 }
0x2d90   :  { %2479 = vrot.lane.b32.xlu1 %v2477_v50, %s4210_s3 }
0x2e02   :  { %v2480_v54 = vpop.permute.xlu1 %2479 }
0x2e03   :  { %v2482_v60 = vadd.f32 %v2480_v54, %v2472_v52 }
0x2e05   :  { %4132 = vtanh.f32 %v2482_v60  ;;  %v2577_v9 = vrot.slane %v2482_v60, 6 }
0x2e0f   :  { %v4133_v59 = vpop.eup %4132 }
0x2e10   :  { %2485 = vrot.lane.b32.xlu0 %v4133_v59, %s4209_s17 }
0x2e82   :  { %v2486_v3 = vpop.permute.xlu0 %2485 }
0x2e83   :  { %v2488_v37 = vmul.f32 %v4131_v38, %v2486_v3 }
0x2e85   :  { %v2490_v55 = vrot.slane %v2488_v37, 4 }
0x2e87   :  { %2491 = vrot.lane.b32.xlu1 %v2490_v55, %s4210_s3 }
0x2ef9   :  { %v2492_v56 = vpop.permute.xlu1 %2491 }
0x2efa   :  { %3711 = vmatmul.mubr.msk.f32.vlgmr.msra.gmra.mrb[22].mxu1 %vm236_vm2, %v2492_v56 }
0x2efb   :  { %3947 = vmatpush3.bf16.msra.mxu1 %v4700_v53  ;;  %3732 = vmatprep.mubr.msk.f32.mxu1 %vm4207_vm1, %v4208_v12 }
0x2efc   :  { %3948 = vmatprep.subr.bf16.mxu1 %v4206_v8 }
0x2eff   :  { %3950 = vmatpush3.bf16.msra.mxu1 %v4709_v43 }
0x2f00   :  { %3957 = vmatprep.subr.bf16.mxu1 %v4206_v8 }
0x2fcd   :  { %v2561_v27 = vpop.f32.mrb[22].mxu1 }
0x2fce   :  { %v2566_v58 = vrot.slane %v2561_v27, 2  ;;  %v3712_v62 = vpop.f32.mrb[23].mxu1 }
0x2fd0   :  { %v2568_v63 = vadd.f32 %v2566_v58, %v4736_v57 }
0x2fd2   :  { %4134 = vtanh.f32 %v2568_v63  ;;  %v3270_v0 = vmul.f32 -1.442695, %v2568_v63 }
0x2fd4   :  { %4136 = vpow2.f32 %v3270_v0 }
0x2fdc   :  { %v4135_v31 = vpop.eup %4134 }
0x2fdd   :  { %2581 = vrot.lane.b32.xlu0 %v4135_v31, %s4209_s17 }
0x2fde   :  { %v4137_v1 = vpop.eup %4136 }
0x2fdf   :  { %v2572_v2 = vadd.f32 1.0, %v4137_v1 }
0x2fe1   :  { %4138 = vrcp.f32 %v2572_v2 }
0x2feb   :  { %v4139_v4 = vpop.eup %4138 }
0x2fec   :  { %v2579_v10 = vmul.f32 %v4139_v4, %v2577_v9 }
0x304f   :  { %v2582_v40 = vpop.permute.xlu0 %2581 }
0x3050   :  { %v2584_v5 = vmul.f32 %v4139_v4, %v2582_v40 }
0x3052   :  { %2586 = vrot.lane.b32.xlu1 %v2584_v5, %s4210_s3 }
0x30c4   :  { %v2587_v14 = vpop.permute.xlu1 %2586 }
0x30c5   :  { %v2589_v11 = vadd.f32 %v2587_v14, %v2579_v10 }
0x30c7   :  { %4140 = vtanh.f32 %v2589_v11  ;;  %v2681_v30 = vrot.slane %v2589_v11, 6 }
0x30d1   :  { %v4141_v57 = vpop.eup %4140 }
0x30d2   :  { %2592 = vrot.lane.b32.xlu0 %v4141_v57, %s4209_s17 }
0x3144   :  { %v2593_v21 = vpop.permute.xlu0 %2592 }
0x3145   :  { %v2595_v16 = vmul.f32 %v4139_v4, %v2593_v21 }
0x3147   :  { %v2597_v18 = vrot.slane %v2595_v16, 6 }
0x3149   :  { %2598 = vrot.lane.b32.xlu1 %v2597_v18, %s4210_s3 }
0x31bb   :  { %v2599_v19 = vpop.permute.xlu1 %2598 }
0x31bc   :  { %3722 = vmatmul.mubr.msk.f32.vlgmr.msra.gmra.mrb[24].mxu0 %vm236_vm2, %v2599_v19 }
0x31bd   :  { %3953 = vmatpush3.bf16.msra.mxu0 %v4700_v53  ;;  %3743 = vmatprep.mubr.msk.f32.mxu0 %vm4207_vm1, %v4208_v12 }
0x31be   :  { %3954 = vmatprep.subr.bf16.mxu0 %v4206_v8 }
0x31c1   :  { %3956 = vmatpush3.bf16.msra.mxu0 %v4709_v43 }
0x31c2   :  { %3963 = vmatprep.subr.bf16.mxu0 %v4206_v8 }
0x328f   :  { %v2668_v20 = vpop.f32.mrb[24].mxu0 }
0x3290   :  { %v2672_v39 = vadd.f32 %v2668_v20, %v4734_v61  ;;  %v3723_v23 = vpop.f32.mrb[25].mxu0 }
0x3292   :  { %4142 = vtanh.f32 %v2672_v39  ;;  %v3272_v25 = vmul.f32 -1.442695, %v2672_v39  ;;  %v3261_v39 = vld [vmem:[%s4880_s12] ss:$0 sm:$0xff] }
0x3294   :  { %4144 = vpow2.f32 %v3272_v25 }
0x329c   :  { %v4143_v22 = vpop.eup %4142 }
0x329d   :  { %2685 = vrot.lane.b32.xlu0 %v4143_v22, %s4209_s17  ;;  %v2178_v22 = vadd.f32 %v4732_v6, %v3261_v39 }
0x329e   :  { %v4145_v26 = vpop.eup %4144 }
0x329f   :  { %v2676_v7 = vadd.f32 1.0, %v4145_v26 }
0x32a1   :  { %4146 = vrcp.f32 %v2676_v7  ;;  %v3279_v7 = vmul.f32 -1.442695, %v2178_v22 }
0x32ab   :  { %v4147_v41 = vpop.eup %4146 }
0x32ac   :  { %v2683_v32 = vmul.f32 %v4147_v41, %v2681_v30 }
0x330f   :  { %v2686_v28 = vpop.permute.xlu0 %2685 }
0x3310   :  { %v2688_v29 = vmul.f32 %v4147_v41, %v2686_v28 }
0x3312   :  { %2690 = vrot.lane.b32.xlu1 %v2688_v29, %s4210_s3 }
0x3384   :  { %v2691_v33 = vpop.permute.xlu1 %2690 }
0x3385   :  { %v2693_v34 = vadd.f32 %v2691_v33, %v2683_v32 }
0x3387   :  { %4148 = vtanh.f32 %v2693_v34 }
0x3391   :  { %v4149_v35 = vpop.eup %4148 }
0x3392   :  { %2696 = vrot.lane.b32.xlu0 %v4149_v35, %s4209_s17 }
0x3404   :  { %v2697_v36 = vpop.permute.xlu0 %2696 }
0x3405   :  { %v2699_v17 = vmul.f32 %v4147_v41, %v2697_v36  ;;  %v3042_v36 = vld [vmem:[%s4881_s13 + $0x20] sm:$0xff] }
0x3407   :  { %2701 = vrot.lane.b32.xlu1 %v2699_v17, %s4210_s3  ;;  %v3043_v17 = vld [vmem:[%s4881_s13 + $0x28] sm:$0xff] }
0x3479   :  { %v2702_v42 = vpop.permute.xlu1 %2701 }
0x347a   :  { %3733 = vmatmul.mubr.msk.f32.vlgmr.msra.gmra.mrb[24].mxu1 %vm236_vm2, %v2702_v42  ;;  %v3964_v42 = vpack.c.bf16 %v3043_v17, %v3042_v36 }
0x347b   :  { %3959 = vmatpush3.bf16.msra.mxu1 %v4700_v53  ;;  %3754 = vmatprep.mubr.msk.f32.mxu1 %vm4207_vm1, %v4208_v12 }
0x347c   :  { %3960 = vmatprep.subr.bf16.mxu1 %v4206_v8 }
0x347f   :  { %3962 = vmatpush3.bf16.msra.mxu1 %v4709_v43  ;;  %v2787_v43 = vrot.slane %v2693_v34, 6 }
0x3480   :  { %3969 = vmatprep.subr.bf16.mxu1 %v4206_v8 }
0x354d   :  { %v2771_v44 = vpop.f32.mrb[24].mxu1 }
0x354e   :  { %v2776_v45 = vrot.slane %v2771_v44, 6  ;;  %v3734_v13 = vpop.f32.mrb[25].mxu1 }
0x3550   :  { %v2778_v46 = vadd.f32 %v2776_v45, %v4734_v61 }
0x3552   :  { %4150 = vtanh.f32 %v2778_v46  ;;  %v3274_v48 = vmul.f32 -1.442695, %v2778_v46 }
0x3554   :  { %4152 = vpow2.f32 %v3274_v48  ;;  %v3044_v48 = vld [vmem:[%s4881_s13 + $0x30] sm:$0xff] }
0x355c   :  { %v4151_v47 = vpop.eup %4150 }
0x355d   :  { %2791 = vrot.lane.b32.xlu0 %v4151_v47, %s4209_s17 }
0x355e   :  { %v4153_v53 = vpop.eup %4152 }
0x355f   :  { %v2782_v15 = vadd.f32 1.0, %v4153_v53  ;;  %v3045_v53 = vld [vmem:[%s4881_s13 + $0x38] sm:$0xff] }
0x3561   :  { %4154 = vrcp.f32 %v2782_v15  ;;  %v3967_v15 = vpack.c.bf16 %v3045_v53, %v3044_v48 }
0x356b   :  { %v4155_v49 = vpop.eup %4154 }
0x356c   :  { %v2789_v50 = vmul.f32 %v4155_v49, %v2787_v43 }
0x35cf   :  { %v2792_v38 = vpop.permute.xlu0 %2791 }
0x35d0   :  { %v2794_v24 = vmul.f32 %v4155_v49, %v2792_v38  ;;  %v3039_v38 = vld [vmem:[%s4881_s13 + $0x8] sm:$0xff] }
0x35d2   :  { %2796 = vrot.lane.b32.xlu1 %v2794_v24, %s4210_s3  ;;  %v3040_v24 = vld [vmem:[%s4881_s13 + $0x10] sm:$0xff] }
0x3644   :  { %v2797_v51 = vpop.permute.xlu1 %2796 }
0x3645   :  { %v2799_v52 = vadd.f32 %v2797_v51, %v2789_v50  ;;  %v3041_v50 = vld [vmem:[%s4881_s13 + $0x18] sm:$0xff] }
0x3646   :  { %v3973_v51 = vpack.c.bf16 %v3041_v50, %v3040_v24 }
0x3647   :  { %4156 = vtanh.f32 %v2799_v52  ;;  %v2894_v40 = vrot.slane %v2799_v52, 6 }
0x3651   :  { %v4157_v54 = vpop.eup %4156 }
0x3652   :  { %2802 = vrot.lane.b32.xlu0 %v4157_v54, %s4209_s17 }
0x36c4   :  { %v2803_v60 = vpop.permute.xlu0 %2802 }
0x36c5   :  { %v2805_v59 = vmul.f32 %v4155_v49, %v2803_v60  ;;  %v3038_v49 = vld [vmem:[%s4881_s13] sm:$0xff] }
0x36c6   :  { %v3970_v43 = vpack.c.bf16 %v3039_v38, %v3038_v49 }
0x36c7   :  { %v2807_v3 = vrot.slane %v2805_v59, 2 }
0x36c9   :  { %2808 = vrot.lane.b32.xlu1 %v2807_v3, %s4210_s3 }
0x373b   :  { %v2809_v37 = vpop.permute.xlu1 %2808 }
0x373c   :  { %3744 = vmatmul.mubr.msk.f32.vlgmr.msra.gmra.mrb[26].mxu0 %vm236_vm2, %v2809_v37 }
0x373d   :  { %3765 = vmatprep.mubr.msk.f32.mxu0 %vm4207_vm1, %v4208_v12  ;;  %3965 = vmatpush3.bf16.msra.mxu0 %v3964_v42 }
0x373e   :  { %3966 = vmatprep.subr.bf16.mxu0 %v4206_v8 }
0x3741   :  { %3968 = vmatpush3.bf16.msra.mxu0 %v3967_v15 }
0x380f   :  { %v2878_v55 = vpop.f32.mrb[26].mxu0 }
0x3810   :  { %v2883_v56 = vrot.slane %v2878_v55, 4  ;;  %v3745_v27 = vpop.f32.mrb[27].mxu0 }
0x3812   :  { %v2885_v58 = vadd.f32 %v2883_v56, %v4734_v61 }
0x3814   :  { %4158 = vtanh.f32 %v2885_v58  ;;  %v3276_v63 = vmul.f32 -1.442695, %v2885_v58 }
0x3816   :  { %4160 = vpow2.f32 %v3276_v63  ;;  %v3282_v63 = vld [vmem:[%s4882_s14] ss:$0 sm:$0xff] }
0x381e   :  { %v4159_v62 = vpop.eup %4158 }
0x381f   :  { %2898 = vrot.lane.b32.xlu0 %v4159_v62, %s4209_s17 }
0x3820   :  { %v4161_v31 = vpop.eup %4160 }
0x3821   :  { %v2889_v0 = vadd.f32 1.0, %v4161_v31 }
0x3823   :  { %4162 = vrcp.f32 %v2889_v0 }
0x382d   :  { %v4163_v1 = vpop.eup %4162 }
0x382e   :  { %v2896_v5 = vmul.f32 %v4163_v1, %v2894_v40 }
0x3891   :  { %v2899_v2 = vpop.permute.xlu0 %2898 }
0x3892   :  { %v2901_v4 = vmul.f32 %v4163_v1, %v2899_v2 }
0x3894   :  { %2903 = vrot.lane.b32.xlu1 %v2901_v4, %s4210_s3 }
0x3906   :  { %v2904_v9 = vpop.permute.xlu1 %2903 }
0x3907   :  { %v2906_v10 = vadd.f32 %v2904_v9, %v2896_v5 }
0x3909   :  { %4164 = vtanh.f32 %v2906_v10  ;;  %v3001_v45 = vrot.slane %v2906_v10, 6 }
0x3913   :  { %v4165_v14 = vpop.eup %4164 }
0x3914   :  { %2909 = vrot.lane.b32.xlu0 %v4165_v14, %s4209_s17 }
0x3986   :  { %v2910_v11 = vpop.permute.xlu0 %2909 }
0x3987   :  { %v2912_v57 = vmul.f32 %v4163_v1, %v2910_v11 }
0x3989   :  { %v2914_v21 = vrot.slane %v2912_v57, 4 }
0x398b   :  { %2915 = vrot.lane.b32.xlu1 %v2914_v21, %s4210_s3 }
0x39fd   :  { %v2916_v16 = vpop.permute.xlu1 %2915 }
0x39fe   :  { %3755 = vmatmul.mubr.msk.f32.vlgmr.msra.gmra.mrb[26].mxu1 %vm236_vm2, %v2916_v16 }
0x39ff   :  { %3776 = vmatprep.mubr.msk.f32.mxu1 %vm4207_vm1, %v4208_v12  ;;  %3971 = vmatpush3.bf16.msra.mxu1 %v3970_v43 }
0x3a00   :  { %3972 = vmatprep.subr.bf16.mxu1 %v4206_v8 }
0x3a03   :  { %3974 = vmatpush3.bf16.msra.mxu1 %v3973_v51 }
0x3ad1   :  { %v2985_v18 = vpop.f32.mrb[26].mxu1 }
0x3ad2   :  { %v2990_v19 = vrot.slane %v2985_v18, 2  ;;  %v3756_v20 = vpop.f32.mrb[27].mxu1 }
0x3ad4   :  { %v2992_v23 = vadd.f32 %v2990_v19, %v4734_v61 }
0x3ad6   :  { %4166 = vtanh.f32 %v2992_v23  ;;  %v3278_v12 = vmul.f32 -1.442695, %v2992_v23 }
0x3ad7   :  { %4168 = vtanh.f32 %v2178_v22 }
0x3ad8   :  { %4170 = vpow2.f32 %v3278_v12 }
0x3ad9   :  { %4172 = vpow2.f32 %v3279_v7 }
0x3ae0   :  { %v4167_v25 = vpop.eup %4166 }
0x3ae1   :  { %3005 = vrot.lane.b32.xlu0 %v4167_v25, %s4209_s17  ;;  %v4169_v26 = vpop.eup %4168 }
0x3ae2   :  { %v4171_v41 = vpop.eup %4170 }
0x3ae3   :  { %v2996_v28 = vadd.f32 1.0, %v4171_v41  ;;  %v4173_v29 = vpop.eup %4172 }
0x3ae4   :  { %v3023_v30 = vadd.f32 1.0, %v4173_v29 }
0x3ae5   :  { %3028 = vrot.lane.b32.xlu0 %v4169_v26, %s4209_s17  ;;  %4174 = vrcp.f32 %v2996_v28 }
0x3ae6   :  { %4176 = vrcp.f32 %v3023_v30 }
0x3aef   :  { %v4175_v61 = vpop.eup %4174 }
0x3af0   :  { %v4177_v33 = vpop.eup %4176  ;;  %v3003_v13 = vmul.f32 %v4175_v61, %v3001_v45 }
0x3b53   :  { %v3006_v6 = vpop.permute.xlu0 %3005 }
0x3b54   :  { %v3008_v32 = vmul.f32 %v4175_v61, %v3006_v6 }
0x3b56   :  { %3010 = vrot.lane.b32.xlu1 %v3008_v32, %s4210_s3 }
0x3b57   :  { %v3029_v34 = vpop.permute.xlu0 %3028 }
0x3b58   :  { %v3031_v35 = vmul.f32 %v4177_v33, %v3029_v34 }
0x3b5a   :  { %4178 = vtanh.f32 %v3031_v35 }
0x3b64   :  { %v4179_v44 = vpop.eup %4178 }
0x3b65   :  { %3034 = vrot.lane.b32.xlu0 %v4179_v44, %s4211_s28 }
0x3bc8   :  { %v3011_v46 = vpop.permute.xlu1 %3010 }
0x3bc9   :  { %v3013_v47 = vadd.f32 %v3011_v46, %v3003_v13 }
0x3bcb   :  { %4180 = vtanh.f32 %v3013_v47 }
0x3bd5   :  { %v4181_v52 = vpop.eup %4180 }
0x3bd6   :  { %3016 = vrot.lane.b32.xlu1 %v4181_v52, %s4209_s17 }
0x3bd7   :  { %v3035_v54 = vpop.permute.xlu0 %3034 }
0x3bd8   :  { %v3037_v60 = vmul.f32 %v4177_v33, %v3035_v54 }
0x3bda   :  { %v3047_v59 = vrot.slane %v3037_v60, 6 }
0x3bdc   :  { %3048 = vrot.lane.b32.xlu1 %v3047_v59, %s4210_s3 }
0x3c48   :  { %v3017_v3 = vpop.permute.xlu1 %3016 }
0x3c49   :  { %v3019_v37 = vmul.f32 %v4175_v61, %v3017_v3 }
0x3c4b   :  { %v3123_v55 = vrot.slane %v3019_v37, 6 }
0x3c4d   :  { %3124 = vrot.lane.b32.xlu0 %v3123_v55, %s4210_s3  ;;  %s4182_s3 = scalar_lea.vmem %s3215_s6, 32 }
0x3c4e   :  { %v3049_v56 = vpop.permute.xlu1 %3048  ;;  %p4183_p0 = scmp.ne.s32.totalorder %s3215_s6, %s4182_s3  ;;  %p4188_p2 = scmp.lt.s32.totalorder %s4182_s3, %s4182_s3 }
0x3c4f   :  { %3766 = vmatmul.mubr.msk.f32.vlgmr.msra.gmra.mrb[28].mxu0 %vm236_vm2, %v3049_v56 }
0x3c50   :  { %p4189_p3 = por %p4188_p2, %p4187_p1 }
0x3c52   :  { %p4190_p4 = pnand %p4189_p3, %p4183_p0 }
0x3cbf   :  { %v3125_v27 = vpop.permute.xlu0 %3124 }
0x3cc0   :  { %3777 = vmatmul.mubr.msk.f32.vlgmr.msra.gmra.mrb[28].mxu1 %vm236_vm2, %v3125_v27 }
0x3d22   :  { %v3118_v8 = vpop.f32.mrb[28].mxu0 }
0x3d23   :  { %v3767_v58 = vpop.f32.mrb[29].mxu0 }
0x3d93   :  { %v3194_v62 = vpop.f32.mrb[28].mxu1 }
0x3d94   :  { %v3195_v31 = vadd.f32 %v3194_v62, %v3118_v8  ;;  %v3778_v0 = vpop.f32.mrb[29].mxu1 }
0x3d96   :  { %v3205_v1 = vadd.f32 %v3282_v63, %v3195_v31 }
0x3d98   :  { %3207 = vst.msk [vmem:[#allocation3] sm:$0x3] %vm3206_vm12, %v3205_v1 }
0x3d99   :  { %4193 = shalt.err (!%p4190_p4)
}
0x3d9a   :  { %s4194_s24 = scalar_lea.hbm %s4883_s15, 32 }
0x3d9b   :  { %p4195_p5 = scmp.ne.s32.totalorder %s4883_s15, %s4194_s24  ;;  %p4198_p6 = scmp.lt.u32.totalorder %s4194_s24, %s4883_s15 }
0x3d9d   :  { %p4200_p7 = pnand %p4198_p6, %p4195_p5 }
0x3d9f   :  { %4203 = shalt.err (!%p4200_p7)
}
0x3da0   :  { %3217 = dma.vmem_to_hbm [thread:$0]  %s3215_s6, 32, %s4883_s15, [#allocation4]  }
0x3da1   :  { %4204 = dma.done.wait [#allocation4], 32  }
0x3da2   :  { %4205 = vsyncadd [#allocation4], 4294967264 }
0x3da3   :  { %3221 = vsyncpa [#allocation4], 1 }

</bundles_post_ra>
